<compile_context>
chip_gen: v6e
topology: v6e:2x2x1
jax: 0.10.0
libtpu: 0.0.40
codegen_flags: <defaults>
</compile_context>

<pallas_src>
import math

import jax
import jax.numpy as jnp
from jax.experimental import pallas as pl
from jax.experimental.pallas import tpu as pltpu

NUM_HEADS = 4


def _sab_attend(Xres, QKV, Wexp, B, N):
    """Attention half of a Set-Attention Block (additive compat, scaled
    softmax, value embedding, per-head reduce, residual), vectorized over
    heads and batch.

    Xres : (B*N, H)  residual input
    QKV  : (B*N, 3H) fused Q/K/V projections (bias already folded in)
    Wexp : (H, H)    Wexp[c, f] = scale * wc[head(f), c - head(f)*dh]
                     if head(c) == head(f) else 0.
                     One MXU matmul = per-head additive reduce + 1/sqrt(dh)
                     scaling + replication of head logits across that head's
                     dh lanes.
    """
    BN, H = Xres.shape
    Q = QKV[:, 0 * H:1 * H].reshape(B, N, H)
    K = QKV[:, 1 * H:2 * H].reshape(B, N, H)
    V = QKV[:, 2 * H:3 * H].reshape(B, N, H)

    # Additive compatibility for all heads at once: one EUP tanh burst.
    T = jnp.tanh(Q[:, :, None, :] + K[:, None, :, :])                    # (B,N,N,H)

    # Per-head reduce on the MXU (replaces per-head lane slices + XLU reduces).
    e = jnp.dot(T.reshape(B * N * N, H), Wexp,
                preferred_element_type=jnp.float32).reshape(B, N, N, H)

    # Scaled softmax over keys (axis=2); logits are replicated across each
    # head's dh lanes, so this is exactly the per-head softmax.
    m = jnp.max(e, axis=2, keepdims=True)
    p = jnp.exp(e - m)
    a = p * pl.reciprocal(jnp.sum(p, axis=2, keepdims=True), approx=True)

    # Attention-weighted value sum == per-head (A_h @ V_h), head-concatenated.
    attn = jnp.sum(a * V[:, None, :, :], axis=2)                         # (B,N,H)
    return Xres + attn.reshape(BN, H)                                    # residual


def affinity_add_kernel(x_ref, w1_ref, wfused_ref, wqkv2_ref,
                        wfqk_ref, wexp_ref, b_ref, out_ref):
    B, N, _ = out_ref.shape
    H = w1_ref.shape[1]

    X = x_ref[...]                                               # (B*N, D)

    # fc: first Linear + Tanh
    h = jnp.tanh(jnp.dot(X, w1_ref[...], preferred_element_type=jnp.float32)
                 + b_ref[0:1, :H])

    # Fused [fc second Linear | SAB#1 QKV projection]: one (H, 4H) matmul with
    # an exactly lane-dense (128-wide) output.
    Y = (jnp.dot(h, wfused_ref[...], preferred_element_type=jnp.float32)
         + b_ref[1:2, :4 * H])                                   # (B*N, 4H)
    X1 = Y[:, :H]                                                # (B*N, H)
    QKV1 = Y[:, H:4 * H]                                         # (B*N, 3H)

    # SAB encoder block #1
    X2 = _sab_attend(X1, QKV1, wexp_ref[0], B, N)

    # SAB encoder block #2 (its QKV depends on X2, so project in-kernel)
    QKV2 = (jnp.dot(X2, wqkv2_ref[...], preferred_element_type=jnp.float32)
            + b_ref[2:3, :3 * H])
    X3 = _sab_attend(X2, QKV2, wexp_ref[1], B, N)

    # fc_q / fc_k fused into one matmul
    QK = (jnp.dot(X3, wfqk_ref[...], preferred_element_type=jnp.float32)
          + b_ref[3:4, :2 * H])                                  # (B*N, 2H)
    Q = QK[:, :H].reshape(B, N, H)
    K = QK[:, H:2 * H].reshape(B, N, H)

    # AddComp: E[b, i, j] = v . tanh(Q_i + K_j)
    v = b_ref[4:5, :H]                                           # (1, H)
    T = jnp.tanh(Q[:, :, None, :] + K[:, None, :, :])            # (B,N,N,H)
    E = jnp.sum(T * v, axis=-1)                                  # (B,N,N)
    # TODO(synk): for non-toy N, key-tile the (N,N,H) compat tensors with an
    # online softmax, move this reduce onto the MXU as (B*N*N,H)@(H,1), and set
    # vmem_limit_bytes explicitly (v7x has only 64 MiB physical VMEM).

    # logits = 0.5 * (E + E^T); B is tiny & static -> unrolled per-batch write.
    for b in range(B):
        Eb = E[b]
        out_ref[b] = 0.5 * (Eb + Eb.T)


def affinity_add(x, packed):
    """x: (B, N, D) float32; packed: dict produced by pack_params()."""
    B, N, D = x.shape
    xf = x.reshape(B * N, D)

    inputs = [xf, packed["w1"], packed["wfused"], packed["wqkv2"],
              packed["wfqk"], packed["wexp"], packed["bias"]]

    def full_spec(arr):
        nd = arr.ndim
        return pl.BlockSpec(arr.shape, lambda i, _nd=nd: (0,) * _nd)

    return pl.pallas_call(
        affinity_add_kernel,
        out_shape=jax.ShapeDtypeStruct((B, N, N), jnp.float32),
        grid_spec=pltpu.PrefetchScalarGridSpec(
            num_scalar_prefetch=0,
            # Single grid step: the whole working set is << 1 MiB, so one
            # invocation removes per-step overhead. For large B, reintroduce a
            # leading batch axis marked "parallel" (v7x: 2 TensorCores/chip).
            grid=(1,),
            in_specs=[full_spec(a) for a in inputs],
            out_specs=pl.BlockSpec((B, N, N), lambda i: (0, 0, 0)),
        ),
        compiler_params=pltpu.CompilerParams(
            dimension_semantics=("arbitrary",)),
    )(*inputs)


def init_params(key, input_size, hidden_size, num_heads=NUM_HEADS):
    """Raw (PyTorch-layout) parameters of the module."""
    dh = hidden_size // num_heads
    shapes = {
        "w1": (input_size, hidden_size), "b1": (1, hidden_size),
        "w2": (hidden_size, hidden_size), "b2": (1, hidden_size),
        # SAB #1
        "wq1": (hidden_size, hidden_size), "bq1": (1, hidden_size),
        "wk1": (hidden_size, hidden_size), "bk1": (1, hidden_size),
        "wv1": (hidden_size, hidden_size), "bv1": (1, hidden_size),
        "wc1": (num_heads, dh),
        # SAB #2
        "wq2": (hidden_size, hidden_size), "bq2": (1, hidden_size),
        "wk2": (hidden_size, hidden_size), "bk2": (1, hidden_size),
        "wv2": (hidden_size, hidden_size), "bv2": (1, hidden_size),
        "wc2": (num_heads, dh),
        # fc_q / fc_k
        "wfq": (hidden_size, hidden_size), "bfq": (1, hidden_size),
        "wfk": (hidden_size, hidden_size), "bfk": (1, hidden_size),
        # AddComp projection vector
        "vcomp": (1, hidden_size),
    }
    params = {}
    keys = jax.random.split(key, len(shapes))
    for k_i, (name, shape) in zip(keys, shapes.items()):
        params[name] = (0.1 * jax.random.normal(k_i, shape)).astype(jnp.float32)
    return params


def pack_params(p, num_heads=NUM_HEADS):
    """Host-side packing of raw params into the kernel's 6 parameter refs."""
    H = p["w2"].shape[0]
    dh = H // num_heads
    scale = 1.0 / math.sqrt(dh)

    def flat(a):
        return a.reshape(-1)

    # Fused projection weights.
    wqkv1 = jnp.concatenate([p["wq1"], p["wk1"], p["wv1"]], axis=1)    # (H, 3H)
    wqkv2 = jnp.concatenate([p["wq2"], p["wk2"], p["wv2"]], axis=1)    # (H, 3H)
    wfqk = jnp.concatenate([p["wfq"], p["wfk"]], axis=1)               # (H, 2H)

    # Fuse fc's second Linear with SAB#1's QKV projection:
    #   X1   = h @ w2 + b2
    #   QKV1 = X1 @ wqkv1 + bqkv1 = h @ (w2 @ wqkv1) + (b2 @ wqkv1 + bqkv1)
    # -> one (H, 4H) matmul in-kernel yields [X1 | QKV1].
    wfused = jnp.concatenate([p["w2"], p["w2"] @ wqkv1], axis=1)       # (H, 4H)
    bqkv1 = jnp.concatenate([flat(p["bq1"]), flat(p["bk1"]), flat(p["bv1"])])
    bfused = jnp.concatenate(
        [flat(p["b2"]), flat(p["b2"].reshape(1, -1) @ wqkv1) + bqkv1])  # (4H,)

    # Per-head additive-compat vectors -> block "rank-1" (H, H) matrices with
    # the 1/sqrt(dh) softmax scale folded in (see _sab_attend docstring).
    head_mask = jnp.kron(jnp.eye(num_heads, dtype=jnp.float32),
                         jnp.ones((dh, dh), jnp.float32))              # (H, H)

    def expand(wc):
        return scale * head_mask * flat(wc)[:, None]

    wexp = jnp.stack([expand(p["wc1"]), expand(p["wc2"])])             # (2, H, H)

    # All biases + AddComp vector packed into one lane-padded slab.
    pad = ((max(4 * H, 128) + 127) // 128) * 128

    def row(v):
        v = flat(v)
        return jnp.pad(v, (0, pad - v.shape[0]))

    bias = jnp.stack([
        row(p["b1"]),
        row(bfused),
        row(jnp.concatenate([flat(p["bq2"]), flat(p["bk2"]), flat(p["bv2"])])),
        row(jnp.concatenate([flat(p["bfq"]), flat(p["bfk"])])),
        row(p["vcomp"]),
    ]).astype(jnp.float32)

    return {"w1": p["w1"], "wfused": wfused.astype(jnp.float32),
            "wqkv2": wqkv2, "wfqk": wfqk,
            "wexp": wexp.astype(jnp.float32), "bias": bias}


def reference_forward(x, p, num_heads=NUM_HEADS):
    """Pure-JAX reference with the original per-head/unfused formulation."""
    H = p["w1"].shape[1]
    dh = H // num_heads
    scale = 1.0 / math.sqrt(dh)

    def sab(X, wq, bq, wk, bk, wv, bv, wc):
        Q = X @ wq + bq.reshape(1, -1)
        K = X @ wk + bk.reshape(1, -1)
        V = X @ wv + bv.reshape(1, -1)
        outs = []
        for h in range(num_heads):
            q = Q[:, h * dh:(h + 1) * dh]
            k = K[:, h * dh:(h + 1) * dh]
            v = V[:, h * dh:(h + 1) * dh]
            e = jnp.sum(jnp.tanh(q[:, None, :] + k[None, :, :]) * wc[h], axis=-1)
            a = jax.nn.softmax(e * scale, axis=-1)
            outs.append(a @ v)
        return X + jnp.concatenate(outs, axis=-1)

    def single(Xb):
        h1 = jnp.tanh(Xb @ p["w1"] + p["b1"].reshape(1, -1))
        X1 = h1 @ p["w2"] + p["b2"].reshape(1, -1)
        X2 = sab(X1, p["wq1"], p["bq1"], p["wk1"], p["bk1"],
                 p["wv1"], p["bv1"], p["wc1"])
        X2 = sab(X2, p["wq2"], p["bq2"], p["wk2"], p["bk2"],
                 p["wv2"], p["bv2"], p["wc2"])
        Q = X2 @ p["wfq"] + p["bfq"].reshape(1, -1)
        K = X2 @ p["wfk"] + p["bfk"].reshape(1, -1)
        v = p["vcomp"].reshape(-1)
        E = jnp.sum(jnp.tanh(Q[:, None, :] + K[None, :, :]) * v, axis=-1)
        return 0.5 * (E + E.T)

    return jax.vmap(single)(x)


if __name__ == "__main__":
    B, N, D, H = 2, 8, 32, 32          # batch, set size, input_size, hidden_size
    key = jax.random.PRNGKey(0)
    kx, kp = jax.random.split(key)
    x = jax.random.normal(kx, (B, N, D), dtype=jnp.float32)

    raw = init_params(kp, D, H)
    packed = pack_params(raw)

    out = affinity_add(x, packed)
    out = jax.block_until_ready(out)

    assert out.shape == (B, N, N), out.shape
    # logits must be symmetric by construction: 0.5 * (E + E^T)
    assert bool(jnp.allclose(out, jnp.swapaxes(out, -1, -2), atol=1e-5))
    # matches the unfused pure-JAX reference of the same semantics
    ref = reference_forward(x, raw)
    assert bool(jnp.allclose(out, ref, atol=2e-2, rtol=2e-2)), \
        float(jnp.max(jnp.abs(out - ref)))
    print("KERNEL_OK")
</pallas_src>

<mosaic_0001>
module attributes {stable_mosaic.version = 11 : i64} {
  func.func @affinity_add_kernel(%arg0: i32, %arg1: memref<16x32xf32, #tpu.memory_space<vmem>>, %arg2: memref<32x32xf32, #tpu.memory_space<vmem>>, %arg3: memref<32x128xf32, #tpu.memory_space<vmem>>, %arg4: memref<32x96xf32, #tpu.memory_space<vmem>>, %arg5: memref<32x64xf32, #tpu.memory_space<vmem>>, %arg6: memref<2x32x32xf32, #tpu.memory_space<vmem>>, %arg7: memref<5x128xf32, #tpu.memory_space<vmem>>, %arg8: memref<2x8x8xf32, #tpu.memory_space<vmem>>) attributes {dimension_semantics = [#tpu.dimension_semantics<arbitrary>], iteration_bounds = array<i64: 1>, scalar_prefetch = 0 : i64, scratch_operands = 0 : i64, tpu.core_type = #tpu.core_type<tc>, window_params = [{pipeline_mode = #tpu.pipeline_mode<synchronous>, transform_indices = @transform_0, window_bounds = array<i64: 16, 32>}, {pipeline_mode = #tpu.pipeline_mode<synchronous>, transform_indices = @transform_1, window_bounds = array<i64: 32, 32>}, {pipeline_mode = #tpu.pipeline_mode<synchronous>, transform_indices = @transform_2, window_bounds = array<i64: 32, 128>}, {pipeline_mode = #tpu.pipeline_mode<synchronous>, transform_indices = @transform_3, window_bounds = array<i64: 32, 96>}, {pipeline_mode = #tpu.pipeline_mode<synchronous>, transform_indices = @transform_4, window_bounds = array<i64: 32, 64>}, {pipeline_mode = #tpu.pipeline_mode<synchronous>, transform_indices = @transform_5, window_bounds = array<i64: 2, 32, 32>}, {pipeline_mode = #tpu.pipeline_mode<synchronous>, transform_indices = @transform_6, window_bounds = array<i64: 5, 128>}, {pipeline_mode = #tpu.pipeline_mode<synchronous>, transform_indices = @transform_7, window_bounds = array<i64: 2, 8, 8>}]} {
    %c0 = arith.constant 0 : index
    %c0_0 = arith.constant 0 : index
    %0 = vector.load %arg1[%c0, %c0_0] : memref<16x32xf32, #tpu.memory_space<vmem>>, vector<16x32xf32>
    %c0_1 = arith.constant 0 : index
    %c0_2 = arith.constant 0 : index
    %1 = vector.load %arg2[%c0_1, %c0_2] : memref<32x32xf32, #tpu.memory_space<vmem>>, vector<32x32xf32>
    %cst = arith.constant dense<0.000000e+00> : vector<16x32xf32>
    %2 = tpu.matmul %0, %1, %cst {dimension_numbers = #tpu.dot_dimension_numbers<[1], [0], [0], [1], [0, 0, 1, 1], [], []>} : vector<16x32xf32>, vector<32x32xf32>, vector<16x32xf32> -> vector<16x32xf32>
    %c0_3 = arith.constant 0 : index
    %c0_4 = arith.constant 0 : index
    %3 = vector.load %arg7[%c0_3, %c0_4] : memref<5x128xf32, #tpu.memory_space<vmem>>, vector<1x32xf32>
    %4 = vector.broadcast %3 : vector<1x32xf32> to vector<16x32xf32>
    %5 = arith.addf %2, %4 : vector<16x32xf32>
    %6 = math.tanh %5 : vector<16x32xf32>
    %c0_5 = arith.constant 0 : index
    %c0_6 = arith.constant 0 : index
    %7 = vector.load %arg3[%c0_5, %c0_6] : memref<32x128xf32, #tpu.memory_space<vmem>>, vector<32x128xf32>
    %cst_7 = arith.constant dense<0.000000e+00> : vector<16x128xf32>
    %8 = tpu.matmul %6, %7, %cst_7 {dimension_numbers = #tpu.dot_dimension_numbers<[1], [0], [0], [1], [0, 0, 1, 1], [], []>} : vector<16x32xf32>, vector<32x128xf32>, vector<16x128xf32> -> vector<16x128xf32>
    %c1 = arith.constant 1 : index
    %c0_8 = arith.constant 0 : index
    %9 = vector.load %arg7[%c1, %c0_8] : memref<5x128xf32, #tpu.memory_space<vmem>>, vector<1x128xf32>
    %10 = vector.broadcast %9 : vector<1x128xf32> to vector<16x128xf32>
    %11 = arith.addf %8, %10 : vector<16x128xf32>
    %12 = vector.extract_strided_slice %11 {offsets = [0, 0], sizes = [16, 32], strides = [1, 1]} : vector<16x128xf32> to vector<16x32xf32>
    %13 = vector.extract_strided_slice %11 {offsets = [0, 32], sizes = [16, 96], strides = [1, 1]} : vector<16x128xf32> to vector<16x96xf32>
    %c0_9 = arith.constant 0 : index
    %c0_10 = arith.constant 0 : index
    %c0_11 = arith.constant 0 : index
    %14 = vector.load %arg6[%c0_9, %c0_10, %c0_11] : memref<2x32x32xf32, #tpu.memory_space<vmem>>, vector<1x32x32xf32>
    %15 = vector.shape_cast %14 : vector<1x32x32xf32> to vector<32x32xf32>
    %16 = vector.extract_strided_slice %13 {offsets = [0, 0], sizes = [16, 32], strides = [1, 1]} : vector<16x96xf32> to vector<16x32xf32>
    %17 = vector.shape_cast %16 : vector<16x32xf32> to vector<2x8x32xf32>
    %18 = vector.extract_strided_slice %13 {offsets = [0, 32], sizes = [16, 32], strides = [1, 1]} : vector<16x96xf32> to vector<16x32xf32>
    %19 = vector.shape_cast %18 : vector<16x32xf32> to vector<2x8x32xf32>
    %20 = vector.extract_strided_slice %13 {offsets = [0, 64], sizes = [16, 32], strides = [1, 1]} : vector<16x96xf32> to vector<16x32xf32>
    %21 = vector.shape_cast %20 : vector<16x32xf32> to vector<2x8x32xf32>
    %22 = vector.shape_cast %17 : vector<2x8x32xf32> to vector<2x8x1x32xf32>
    %23 = vector.shape_cast %19 : vector<2x8x32xf32> to vector<2x1x8x32xf32>
    %24 = vector.broadcast %22 : vector<2x8x1x32xf32> to vector<2x8x8x32xf32>
    %25 = vector.broadcast %23 : vector<2x1x8x32xf32> to vector<2x8x8x32xf32>
    %26 = arith.addf %24, %25 : vector<2x8x8x32xf32>
    %27 = math.tanh %26 : vector<2x8x8x32xf32>
    %28 = vector.shape_cast %27 : vector<2x8x8x32xf32> to vector<128x32xf32>
    %cst_12 = arith.constant dense<0.000000e+00> : vector<128x32xf32>
    %29 = tpu.matmul %28, %15, %cst_12 {dimension_numbers = #tpu.dot_dimension_numbers<[1], [0], [0], [1], [0, 0, 1, 1], [], []>} : vector<128x32xf32>, vector<32x32xf32>, vector<128x32xf32> -> vector<128x32xf32>
    %30 = vector.shape_cast %29 : vector<128x32xf32> to vector<2x8x8x32xf32>
    %cst_13 = arith.constant dense<0xFF800000> : vector<2x8x32xf32>
    %31 = vector.multi_reduction <maximumf>, %30, %cst_13 [2] : vector<2x8x8x32xf32> to vector<2x8x32xf32>
    %32 = vector.shape_cast %31 : vector<2x8x32xf32> to vector<2x8x1x32xf32>
    %33 = vector.broadcast %32 : vector<2x8x1x32xf32> to vector<2x8x8x32xf32>
    %34 = arith.subf %30, %33 : vector<2x8x8x32xf32>
    %35 = math.exp %34 : vector<2x8x8x32xf32>
    %cst_14 = arith.constant dense<0.000000e+00> : vector<2x8x32xf32>
    %36 = vector.multi_reduction <add>, %35, %cst_14 [2] : vector<2x8x8x32xf32> to vector<2x8x32xf32>
    %37 = vector.shape_cast %36 : vector<2x8x32xf32> to vector<2x8x1x32xf32>
    %38 = tpu.reciprocal %37 {approx = true} : vector<2x8x1x32xf32> -> vector<2x8x1x32xf32>
    %39 = vector.broadcast %38 : vector<2x8x1x32xf32> to vector<2x8x8x32xf32>
    %40 = arith.mulf %35, %39 : vector<2x8x8x32xf32>
    %41 = vector.shape_cast %21 : vector<2x8x32xf32> to vector<2x1x8x32xf32>
    %42 = vector.broadcast %41 : vector<2x1x8x32xf32> to vector<2x8x8x32xf32>
    %43 = arith.mulf %40, %42 : vector<2x8x8x32xf32>
    %cst_15 = arith.constant dense<0.000000e+00> : vector<2x8x32xf32>
    %44 = vector.multi_reduction <add>, %43, %cst_15 [2] : vector<2x8x8x32xf32> to vector<2x8x32xf32>
    %45 = vector.shape_cast %44 : vector<2x8x32xf32> to vector<16x32xf32>
    %46 = arith.addf %12, %45 : vector<16x32xf32>
    %c0_16 = arith.constant 0 : index
    %c0_17 = arith.constant 0 : index
    %47 = vector.load %arg4[%c0_16, %c0_17] : memref<32x96xf32, #tpu.memory_space<vmem>>, vector<32x96xf32>
    %cst_18 = arith.constant dense<0.000000e+00> : vector<16x96xf32>
    %48 = tpu.matmul %46, %47, %cst_18 {dimension_numbers = #tpu.dot_dimension_numbers<[1], [0], [0], [1], [0, 0, 1, 1], [], []>} : vector<16x32xf32>, vector<32x96xf32>, vector<16x96xf32> -> vector<16x96xf32>
    %c2 = arith.constant 2 : index
    %c0_19 = arith.constant 0 : index
    %49 = vector.load %arg7[%c2, %c0_19] : memref<5x128xf32, #tpu.memory_space<vmem>>, vector<1x96xf32>
    %50 = vector.broadcast %49 : vector<1x96xf32> to vector<16x96xf32>
    %51 = arith.addf %48, %50 : vector<16x96xf32>
    %c1_20 = arith.constant 1 : index
    %c0_21 = arith.constant 0 : index
    %c0_22 = arith.constant 0 : index
    %52 = vector.load %arg6[%c1_20, %c0_21, %c0_22] : memref<2x32x32xf32, #tpu.memory_space<vmem>>, vector<1x32x32xf32>
    %53 = vector.shape_cast %52 : vector<1x32x32xf32> to vector<32x32xf32>
    %54 = vector.extract_strided_slice %51 {offsets = [0, 0], sizes = [16, 32], strides = [1, 1]} : vector<16x96xf32> to vector<16x32xf32>
    %55 = vector.shape_cast %54 : vector<16x32xf32> to vector<2x8x32xf32>
    %56 = vector.extract_strided_slice %51 {offsets = [0, 32], sizes = [16, 32], strides = [1, 1]} : vector<16x96xf32> to vector<16x32xf32>
    %57 = vector.shape_cast %56 : vector<16x32xf32> to vector<2x8x32xf32>
    %58 = vector.extract_strided_slice %51 {offsets = [0, 64], sizes = [16, 32], strides = [1, 1]} : vector<16x96xf32> to vector<16x32xf32>
    %59 = vector.shape_cast %58 : vector<16x32xf32> to vector<2x8x32xf32>
    %60 = vector.shape_cast %55 : vector<2x8x32xf32> to vector<2x8x1x32xf32>
    %61 = vector.shape_cast %57 : vector<2x8x32xf32> to vector<2x1x8x32xf32>
    %62 = vector.broadcast %60 : vector<2x8x1x32xf32> to vector<2x8x8x32xf32>
    %63 = vector.broadcast %61 : vector<2x1x8x32xf32> to vector<2x8x8x32xf32>
    %64 = arith.addf %62, %63 : vector<2x8x8x32xf32>
    %65 = math.tanh %64 : vector<2x8x8x32xf32>
    %66 = vector.shape_cast %65 : vector<2x8x8x32xf32> to vector<128x32xf32>
    %cst_23 = arith.constant dense<0.000000e+00> : vector<128x32xf32>
    %67 = tpu.matmul %66, %53, %cst_23 {dimension_numbers = #tpu.dot_dimension_numbers<[1], [0], [0], [1], [0, 0, 1, 1], [], []>} : vector<128x32xf32>, vector<32x32xf32>, vector<128x32xf32> -> vector<128x32xf32>
    %68 = vector.shape_cast %67 : vector<128x32xf32> to vector<2x8x8x32xf32>
    %cst_24 = arith.constant dense<0xFF800000> : vector<2x8x32xf32>
    %69 = vector.multi_reduction <maximumf>, %68, %cst_24 [2] : vector<2x8x8x32xf32> to vector<2x8x32xf32>
    %70 = vector.shape_cast %69 : vector<2x8x32xf32> to vector<2x8x1x32xf32>
    %71 = vector.broadcast %70 : vector<2x8x1x32xf32> to vector<2x8x8x32xf32>
    %72 = arith.subf %68, %71 : vector<2x8x8x32xf32>
    %73 = math.exp %72 : vector<2x8x8x32xf32>
    %cst_25 = arith.constant dense<0.000000e+00> : vector<2x8x32xf32>
    %74 = vector.multi_reduction <add>, %73, %cst_25 [2] : vector<2x8x8x32xf32> to vector<2x8x32xf32>
    %75 = vector.shape_cast %74 : vector<2x8x32xf32> to vector<2x8x1x32xf32>
    %76 = tpu.reciprocal %75 {approx = true} : vector<2x8x1x32xf32> -> vector<2x8x1x32xf32>
    %77 = vector.broadcast %76 : vector<2x8x1x32xf32> to vector<2x8x8x32xf32>
    %78 = arith.mulf %73, %77 : vector<2x8x8x32xf32>
    %79 = vector.shape_cast %59 : vector<2x8x32xf32> to vector<2x1x8x32xf32>
    %80 = vector.broadcast %79 : vector<2x1x8x32xf32> to vector<2x8x8x32xf32>
    %81 = arith.mulf %78, %80 : vector<2x8x8x32xf32>
    %cst_26 = arith.constant dense<0.000000e+00> : vector<2x8x32xf32>
    %82 = vector.multi_reduction <add>, %81, %cst_26 [2] : vector<2x8x8x32xf32> to vector<2x8x32xf32>
    %83 = vector.shape_cast %82 : vector<2x8x32xf32> to vector<16x32xf32>
    %84 = arith.addf %46, %83 : vector<16x32xf32>
    %c0_27 = arith.constant 0 : index
    %c0_28 = arith.constant 0 : index
    %85 = vector.load %arg5[%c0_27, %c0_28] : memref<32x64xf32, #tpu.memory_space<vmem>>, vector<32x64xf32>
    %cst_29 = arith.constant dense<0.000000e+00> : vector<16x64xf32>
    %86 = tpu.matmul %84, %85, %cst_29 {dimension_numbers = #tpu.dot_dimension_numbers<[1], [0], [0], [1], [0, 0, 1, 1], [], []>} : vector<16x32xf32>, vector<32x64xf32>, vector<16x64xf32> -> vector<16x64xf32>
    %c3 = arith.constant 3 : index
    %c0_30 = arith.constant 0 : index
    %87 = vector.load %arg7[%c3, %c0_30] : memref<5x128xf32, #tpu.memory_space<vmem>>, vector<1x64xf32>
    %88 = vector.broadcast %87 : vector<1x64xf32> to vector<16x64xf32>
    %89 = arith.addf %86, %88 : vector<16x64xf32>
    %90 = vector.extract_strided_slice %89 {offsets = [0, 0], sizes = [16, 32], strides = [1, 1]} : vector<16x64xf32> to vector<16x32xf32>
    %91 = vector.shape_cast %90 : vector<16x32xf32> to vector<2x8x32xf32>
    %92 = vector.extract_strided_slice %89 {offsets = [0, 32], sizes = [16, 32], strides = [1, 1]} : vector<16x64xf32> to vector<16x32xf32>
    %93 = vector.shape_cast %92 : vector<16x32xf32> to vector<2x8x32xf32>
    %c4 = arith.constant 4 : index
    %c0_31 = arith.constant 0 : index
    %94 = vector.load %arg7[%c4, %c0_31] : memref<5x128xf32, #tpu.memory_space<vmem>>, vector<1x32xf32>
    %95 = vector.shape_cast %91 : vector<2x8x32xf32> to vector<2x8x1x32xf32>
    %96 = vector.shape_cast %93 : vector<2x8x32xf32> to vector<2x1x8x32xf32>
    %97 = vector.broadcast %95 : vector<2x8x1x32xf32> to vector<2x8x8x32xf32>
    %98 = vector.broadcast %96 : vector<2x1x8x32xf32> to vector<2x8x8x32xf32>
    %99 = arith.addf %97, %98 : vector<2x8x8x32xf32>
    %100 = math.tanh %99 : vector<2x8x8x32xf32>
    %101 = vector.shape_cast %94 : vector<1x32xf32> to vector<1x1x1x32xf32>
    %102 = vector.broadcast %101 : vector<1x1x1x32xf32> to vector<2x8x8x32xf32>
    %103 = arith.mulf %100, %102 : vector<2x8x8x32xf32>
    %cst_32 = arith.constant dense<0.000000e+00> : vector<2x8x8xf32>
    %104 = vector.multi_reduction <add>, %103, %cst_32 [3] : vector<2x8x8x32xf32> to vector<2x8x8xf32>
    %105 = vector.extract_strided_slice %104 {offsets = [0, 0, 0], sizes = [1, 8, 8], strides = [1, 1, 1]} : vector<2x8x8xf32> to vector<1x8x8xf32>
    %106 = vector.shape_cast %105 : vector<1x8x8xf32> to vector<8x8xf32>
    %107 = tpu.transpose %106, [1, 0] : vector<8x8xf32> -> vector<8x8xf32>
    %108 = arith.addf %106, %107 : vector<8x8xf32>
    %cst_33 = arith.constant 5.000000e-01 : f32
    %109 = vector.broadcast %cst_33 : f32 to vector<8x8xf32>
    %110 = arith.mulf %109, %108 : vector<8x8xf32>
    %c0_34 = arith.constant 0 : index
    %c0_35 = arith.constant 0 : index
    %c0_36 = arith.constant 0 : index
    %111 = vector.load %arg8[%c0_34, %c0_35, %c0_36] : memref<2x8x8xf32, #tpu.memory_space<vmem>>, vector<1x8x8xf32>
    %112 = vector.shape_cast %111 : vector<1x8x8xf32> to vector<8x8xf32>
    %113 = vector.shape_cast %110 : vector<8x8xf32> to vector<1x8x8xf32>
    tpu.vector_store %arg8[%c0_34, %c0_35, %c0_36], %113 {strides = array<i32>} : memref<2x8x8xf32, #tpu.memory_space<vmem>>, vector<1x8x8xf32>,
    %114 = vector.extract_strided_slice %104 {offsets = [1, 0, 0], sizes = [1, 8, 8], strides = [1, 1, 1]} : vector<2x8x8xf32> to vector<1x8x8xf32>
    %115 = vector.shape_cast %114 : vector<1x8x8xf32> to vector<8x8xf32>
    %116 = tpu.transpose %115, [1, 0] : vector<8x8xf32> -> vector<8x8xf32>
    %117 = arith.addf %115, %116 : vector<8x8xf32>
    %cst_37 = arith.constant 5.000000e-01 : f32
    %118 = vector.broadcast %cst_37 : f32 to vector<8x8xf32>
    %119 = arith.mulf %118, %117 : vector<8x8xf32>
    %c1_38 = arith.constant 1 : index
    %c0_39 = arith.constant 0 : index
    %c0_40 = arith.constant 0 : index
    %120 = vector.load %arg8[%c1_38, %c0_39, %c0_40] : memref<2x8x8xf32, #tpu.memory_space<vmem>>, vector<1x8x8xf32>
    %121 = vector.shape_cast %120 : vector<1x8x8xf32> to vector<8x8xf32>
    %122 = vector.shape_cast %119 : vector<8x8xf32> to vector<1x8x8xf32>
    tpu.vector_store %arg8[%c1_38, %c0_39, %c0_40], %122 {strides = array<i32>} : memref<2x8x8xf32, #tpu.memory_space<vmem>>, vector<1x8x8xf32>,
    return
  }
  func.func @transform_0(%arg0: i32) -> (i32, i32) {
    %c0_i32 = arith.constant 0 : i32
    %c0_i32_0 = arith.constant 0 : i32
    %c0_i32_1 = arith.constant 0 : i32
    return %c0_i32, %c0_i32_0 : i32, i32
  }
  func.func @transform_1(%arg0: i32) -> (i32, i32) {
    %c0_i32 = arith.constant 0 : i32
    %c0_i32_0 = arith.constant 0 : i32
    %c0_i32_1 = arith.constant 0 : i32
    return %c0_i32, %c0_i32_0 : i32, i32
  }
  func.func @transform_2(%arg0: i32) -> (i32, i32) {
    %c0_i32 = arith.constant 0 : i32
    %c0_i32_0 = arith.constant 0 : i32
    %c0_i32_1 = arith.constant 0 : i32
    return %c0_i32, %c0_i32_0 : i32, i32
  }
  func.func @transform_3(%arg0: i32) -> (i32, i32) {
    %c0_i32 = arith.constant 0 : i32
    %c0_i32_0 = arith.constant 0 : i32
    %c0_i32_1 = arith.constant 0 : i32
    return %c0_i32, %c0_i32_0 : i32, i32
  }
  func.func @transform_4(%arg0: i32) -> (i32, i32) {
    %c0_i32 = arith.constant 0 : i32
    %c0_i32_0 = arith.constant 0 : i32
    %c0_i32_1 = arith.constant 0 : i32
    return %c0_i32, %c0_i32_0 : i32, i32
  }
  func.func @transform_5(%arg0: i32) -> (i32, i32, i32) {
    %c0_i32 = arith.constant 0 : i32
    %c0_i32_0 = arith.constant 0 : i32
    %c0_i32_1 = arith.constant 0 : i32
    %c0_i32_2 = arith.constant 0 : i32
    return %c0_i32, %c0_i32_0, %c0_i32_1 : i32, i32, i32
  }
  func.func @transform_6(%arg0: i32) -> (i32, i32) {
    %c0_i32 = arith.constant 0 : i32
    %c0_i32_0 = arith.constant 0 : i32
    %c0_i32_1 = arith.constant 0 : i32
    return %c0_i32, %c0_i32_0 : i32, i32
  }
  func.func @transform_7(%arg0: i32) -> (i32, i32, i32) {
    %c0_i32 = arith.constant 0 : i32
    %c0_i32_0 = arith.constant 0 : i32
    %c0_i32_1 = arith.constant 0 : i32
    %c0_i32_2 = arith.constant 0 : i32
    return %c0_i32, %c0_i32_0, %c0_i32_1 : i32, i32, i32
  }
}

</mosaic_0001>

<bundles_post_ra>
// kernel: tpu_custom_call.1
= control target key start
LH: loop header
LB: loop body
LE: loop exit
PB: predicated region body
PF: predicated region fallthrough
CT: control target
= control target key end

     0   :  { %12 = vsyncpa [#allocation3], 0  ;;  %s4556_s0 = inlined_call_operand.hbm [shape: f32[16,32], index: 0, kind: input, shape index: {}]   ;;  %s4557_s1 = inlined_call_operand.hbm [shape: f32[32,32], index: 1, kind: input, shape index: {}]   ;;  %s4558_s2 = inlined_call_operand.hbm [shape: f32[32,128], index: 2, kind: input, shape index: {}]   ;;  %s4559_s3 = inlined_call_operand.hbm [shape: f32[32,96], index: 3, kind: input, shape index: {}]   ;;  %s4560_s4 = inlined_call_operand.hbm [shape: f32[32,64], index: 4, kind: input, shape index: {}]   ;;  %s4561_s5 = inlined_call_operand.hbm [shape: f32[2,32,32], index: 5, kind: input, shape index: {}]   ;;  %s4562_s6 = inlined_call_operand.vmem [shape: f32[5,128], index: 6, kind: input, shape index: {}]   ;;  %s4563_s7 = inlined_call_operand.hbm [shape: f32[2,8,8], index: 7, kind: output, shape index: {}]  }
   0x1   :  { %13 = vsyncpa [#allocation6], 0 }
   0x2   :  { %14 = vsyncpa [#allocation9], 0 }
   0x3   :  { %15 = vsyncpa [#allocation12], 0 }
   0x4   :  { %16 = vsyncpa [#allocation4], 0  ;;  %s3679_s24 = smov [#allocation5]   ;;  %s3680_s26 = smov [#allocation8]  }
   0x5   :  { %s34_s25 = sshll.u32 %s3679_s24, 4  ;;  %s58_s27 = sshll.u32 %s3680_s26, 4  ;;  %s35_s25 = int_to_ptr.vmem [resolvable:$true] %s34_s25  ;;  %s59_s27 = int_to_ptr.vmem [resolvable:$true] %s58_s27 }
   0x6   :  { %s3537_s28 = scalar_lea.vmem %s35_s25, 512  ;;  %p3542_p1 = scmp.lt.s32.totalorder %s35_s25, %s35_s25 }
   0x7   :  { %p3538_p0 = scmp.ne.s32.totalorder %s35_s25, %s3537_s28  ;;  %p3543_p2 = scmp.lt.s32.totalorder %s3537_s28, %s3537_s28 }
   0x9   :  { %p3544_p3 = por %p3543_p2, %p3542_p1 }
   0xb   :  { %p3545_p4 = pnand %p3544_p3, %p3538_p0 }
   0xd   :  { %3548 = shalt.err (!%p3545_p4)
}
   0xe   :  { %s3681_s29 = smov 128   ;;  %s3682_s30 = smov 8  }
   0xf   :  { %40 = dma.hbm_to_vmem [thread:$0]  %s4557_s1, 512, %s35_s25, [#allocation6], %s3681_s29, %s3681_s29, %s3682_s30  }
  0x10   :  { %s3557_s10 = scalar_lea.vmem %s59_s27, 512  ;;  %p3562_p6 = scmp.lt.s32.totalorder %s59_s27, %s59_s27 }
  0x11   :  { %p3558_p5 = scmp.ne.s32.totalorder %s59_s27, %s3557_s10  ;;  %p3563_p7 = scmp.lt.s32.totalorder %s3557_s10, %s3557_s10 }
  0x13   :  { %p3564_p8 = por %p3563_p7, %p3562_p6 }
  0x15   :  { %p3565_p9 = pnand %p3564_p8, %p3558_p5 }
  0x17   :  { %3568 = shalt.err (!%p3565_p9)
}
  0x18   :  { %64 = dma.hbm_to_vmem [thread:$0]  %s4559_s3, 512, %s59_s27, [#allocation9], %s3681_s29, %s3681_s29, %s3682_s30  }
  0x19   :  { %s3683_s13 = smov [#allocation2]   ;;  %s3684_s15 = smov [#allocation7]  }
  0x1a   :  { %s22_s14 = sshll.u32 %s3683_s13, 4  ;;  %s46_s16 = sshll.u32 %s3684_s15, 4  ;;  %s23_s14 = int_to_ptr.vmem [resolvable:$true] %s22_s14  ;;  %s47_s16 = int_to_ptr.vmem [resolvable:$true] %s46_s16 }
  0x1b   :  { %s3577_s1 = scalar_lea.vmem %s23_s14, 256  ;;  %p3582_p11 = scmp.lt.s32.totalorder %s23_s14, %s23_s14 }
  0x1c   :  { %p3578_p10 = scmp.ne.s32.totalorder %s23_s14, %s3577_s1  ;;  %p3583_p12 = scmp.lt.s32.totalorder %s3577_s1, %s3577_s1 }
  0x1e   :  { %p3584_p13 = por %p3583_p12, %p3582_p11 }
  0x20   :  { %p3585_p0 = pnand %p3584_p13, %p3578_p10 }
  0x22   :  { %3588 = shalt.err (!%p3585_p0)
}
  0x23   :  { %28 = dma.hbm_to_vmem [thread:$0]  %s4556_s0, 256, %s23_s14, [#allocation3], %s3681_s29, %s3681_s29, %s3682_s30  }
  0x24   :  { %s3597_s3 = scalar_lea.vmem %s47_s16, 512  ;;  %p3602_p2 = scmp.lt.s32.totalorder %s47_s16, %s47_s16 }
  0x25   :  { %p3598_p1 = scmp.ne.s32.totalorder %s47_s16, %s3597_s3  ;;  %p3603_p3 = scmp.lt.s32.totalorder %s3597_s3, %s3597_s3 }
  0x27   :  { %p3604_p4 = por %p3603_p3, %p3602_p2 }
  0x29   :  { %p3605_p5 = pnand %p3604_p4, %p3598_p1 }
  0x2b   :  { %3608 = shalt.err (!%p3605_p5)
}
  0x2c   :  { %52 = dma.hbm_to_vmem [thread:$0]  %s4558_s2, 512, %s47_s16, [#allocation6], %s3681_s29, %s3681_s29, %s3682_s30  }
  0x2d   :  { %s3685_s21 = smov [#allocation10]   ;;  %s3686_s23 = smov [#allocation11]  }
  0x2e   :  { %s70_s22 = sshll.u32 %s3685_s21, 4  ;;  %s82_s24 = sshll.u32 %s3686_s23, 4  ;;  %s71_s22 = int_to_ptr.vmem [resolvable:$true] %s70_s22  ;;  %s83_s24 = int_to_ptr.vmem [resolvable:$true] %s82_s24 }
  0x2f   :  { %s3617_s0 = scalar_lea.vmem %s71_s22, 512  ;;  %p3622_p7 = scmp.lt.s32.totalorder %s71_s22, %s71_s22 }
  0x30   :  { %p3618_p6 = scmp.ne.s32.totalorder %s71_s22, %s3617_s0  ;;  %p3623_p8 = scmp.lt.s32.totalorder %s3617_s0, %s3617_s0 }
  0x32   :  { %p3624_p9 = por %p3623_p8, %p3622_p7 }
  0x34   :  { %p3625_p10 = pnand %p3624_p9, %p3618_p6 }
  0x36   :  { %3628 = shalt.err (!%p3625_p10)
}
  0x37   :  { %76 = dma.hbm_to_vmem [thread:$0]  %s4560_s4, 512, %s71_s22, [#allocation9], %s3681_s29, %s3681_s29, %s3682_s30  }
  0x38   :  { %s3637_s2 = scalar_lea.vmem %s83_s24, 1024  ;;  %p3642_p12 = scmp.lt.s32.totalorder %s83_s24, %s83_s24 }
  0x39   :  { %p3638_p11 = scmp.ne.s32.totalorder %s83_s24, %s3637_s2  ;;  %p3643_p13 = scmp.lt.s32.totalorder %s3637_s2, %s3637_s2 }
  0x3b   :  { %p3644_p0 = por %p3643_p13, %p3642_p12 }
  0x3d   :  { %p3645_p1 = pnand %p3644_p0, %p3638_p11 }
  0x3f   :  { %3648 = shalt.err (!%p3645_p1)
}
  0x40   :  { %88 = dma.hbm_to_vmem [thread:$0]  %s4561_s5, 1024, %s83_s24, [#allocation12], %s3681_s29, %s3681_s29, %s3682_s30  }
  0x41   :  { %3669 = dma.done.wait [#allocation3], 256  }
  0x42   :  { %3670 = vsyncadd [#allocation3], 4294967040 }
  0x43   :  { %3671 = dma.done.wait [#allocation6], 1024  }
  0x44   :  { %3672 = vsyncadd [#allocation6], 4294966272 }
  0x45   :  { %3673 = dma.done.wait [#allocation9], 1024  }
  0x46   :  { %3674 = vsyncadd [#allocation9], 4294966272 }
  0x47   :  { %3675 = dma.done.wait [#allocation12], 1024  }
  0x48   :  { %3676 = vsyncadd [#allocation12], 4294966272  ;;  %vm120_vm0 = vcmask 261120   ;;  %v114_v0 = vld [vmem:[#allocation5 + $0x18] sm:$0xff]  ;;  %v113_v1 = vld [vmem:[#allocation5 + $0x10] sm:$0xff]  ;;  %s3687_s10 = smov 96   ;;  %v304_v26 = vlaneseq }
  0x49   :  { %3176 = vmatprep.subr.mxu0 %v114_v0  ;;  %v109_v2 = vld [vmem:[#allocation2] sm:$0xff]  ;;  %v112_v3 = vld [vmem:[#allocation5 + $0x8] sm:$0xff]  ;;  %v111_v4 = vld [vmem:[#allocation5] sm:$0xff]  ;;  %v3688_v24 = vmov 1966171168   ;;  %s3689_s11 = smov 32  }
  0x4a   :  { %3177 = vmatpush3.msra.mxu0 %v114_v0  ;;  %3184 = vmatprep.mubr.msk.f32.mxu0 %vm120_vm0, %v109_v2  ;;  %v110_v5 = vld [vmem:[#allocation2 + $0x8] sm:$0xff]  ;;  %v206_v7 = vld [vmem:[#allocation7 + $0x10] sm:$0xff]  ;;  %v205_v8 = vld [vmem:[#allocation7 + $0x8] sm:$0xff]  ;;  %v302_v25 = vunpack.c.l.s4 %v3688_v24  ;;  %v3788_v28 = vshrl.u32 %v304_v26, 7  ;;  %vm1195_vm1 = vcmask 1041409   ;;  %vm1197_vm2 = vcmask 1042434  }
  0x4b   :  { %3178 = vmatprep.subr.mxu0 %v113_v1  ;;  %v207_v6 = vld [vmem:[#allocation7 + $0x18] sm:$0xff]  ;;  %v204_v9 = vld [vmem:[#allocation7] sm:$0xff]  ;;  %v3067_v10 = vld [vmem:[%s4562_s6] ss:$0 sm:$0xff]  ;;  %vm1199_vm3 = vcmask 1043459   ;;  %vm1201_vm4 = vcmask 1044484  }
  0x4c   :  { %3179 = vmatpush3.msra.mxu0 %v113_v1  ;;  %3187 = vmatprep.subr.mxu1 %v207_v6  ;;  %v3070_v18 = vld [vmem:[%s4562_s6 + $0x1] ss:$0 sm:$0xff]  ;;  %v297_v22 = vld [vmem:[#allocation11 + $0x18] sm:$0xff]  ;;  %v303_v27 = vunpack.c.0.s8 %v302_v25  ;;  %v3800_v35 = vsub.s32 0, %v3788_v28  ;;  %vm1203_vm5 = vcmask 1045509   ;;  %vm1205_vm6 = vcmask 1046534  }
  0x4d   :  { %3180 = vmatprep.subr.mxu0 %v112_v3  ;;  %3188 = vmatpush3.msra.mxu1 %v207_v6  ;;  %v296_v23 = vld [vmem:[#allocation11 + $0x10] sm:$0xff]  ;;  %vm1207_vm7 = vcmask 1047559   ;;  %s3690_s14 = smov 64   ;;  %vm2810_vm8 = vcmask 64512  }
  0x4e   :  { %3181 = vmatpush3.msra.mxu0 %v112_v3  ;;  %3189 = vmatprep.subr.mxu1 %v206_v7  ;;  %v3791_v29 = vsub.s32 %v303_v27, %v3788_v28  ;;  %v295_v3 = vld [vmem:[#allocation11 + $0x8] sm:$0xff] }
  0x4f   :  { %3182 = vmatprep.subr.mxu0 %v111_v4  ;;  %3190 = vmatpush3.msra.mxu1 %v206_v7 }
  0x50   :  { %3183 = vmatpush3.msra.mxu0 %v111_v4  ;;  %3191 = vmatprep.subr.mxu1 %v205_v8  ;;  %v294_v4 = vld [vmem:[#allocation11] sm:$0xff] }
  0x51   :  { %3185 = vmatmul.mubr.msk.f32.vlgmr.msra.gmra.mxu0 %vm120_vm0, %v110_v5  ;;  %3192 = vmatpush3.msra.mxu1 %v205_v8 }
  0x52   :  { %3193 = vmatprep.subr.mxu1 %v204_v9  ;;  %3198 = vmatprep.subr.mxu0 %v297_v22 }
  0x53   :  { %3194 = vmatpush3.msra.mxu1 %v204_v9  ;;  %3199 = vmatpush3.msra.mxu0 %v297_v22 }
  0x54   :  { %3200 = vmatprep.subr.mxu0 %v296_v23 }
  0x55   :  { %3201 = vmatpush3.msra.mxu0 %v296_v23 }
  0x56   :  { %3202 = vmatprep.subr.mxu0 %v295_v3 }
  0x57   :  { %3203 = vmatpush3.msra.mxu0 %v295_v3 }
  0x58   :  { %3204 = vmatprep.subr.mxu0 %v294_v4 }
  0x59   :  { %3205 = vmatpush3.msra.mxu0 %v294_v4 }
 0x111   :  { %v3186_v11 = vpop.f32.mrf.mxu0 }
 0x112   :  { %v199_v12 = vadd.f32 %v3186_v11, %v3067_v10 }
 0x113   :  { %v193_v13 = vpop.f32.mrf.mxu0 }
 0x114   :  { %v194_v14 = vadd.f32 %v3067_v10, %v193_v13 }
 0x116   :  { %3301 = vtanh.f32 %v194_v14 }
 0x117   :  { %3303 = vtanh.f32 %v199_v12 }
 0x123   :  { %v3302_v15 = vpop.eup %3301 }
 0x124   :  { %v3304_v16 = vpop.eup %3303  ;;  %3195 = vmatprep.mubr.msk.f32.mxu1 %vm120_vm0, %v3302_v15 }
 0x125   :  { %3196 = vmatmul.mubr.msk.f32.vlgmr.msra.gmra.mxu1 %vm120_vm0, %v3304_v16 }
 0x1e5   :  { %v3197_v17 = vpop.f32.mrf.mxu1 }
 0x1e6   :  { %v3783_v21 = vadd.f32 %v3197_v17, %v3070_v18 }
 0x1e7   :  { %v285_v19 = vpop.f32.mrf.mxu1 }
 0x1e8   :  { %v3779_v20 = vadd.f32 %v3070_v18, %v285_v19  ;;  %v356_v40 = vrot.slane %v3783_v21, %v3791_v29  ;;  %v349_v44 = vcombine.high %v3783_v21, %v3783_v21 }
 0x1ea   :  { %478 = vrot.lane.b32.xlu0 %v3779_v20, %s3687_s10  ;;  %v307_v30 = vrot.slane %v3779_v20, %v3791_v29  ;;  %v300_v31 = vcombine.high %v3779_v20, %v3779_v20  ;;  %v372_v45 = vrot.slane %v356_v40, %v3791_v29  ;;  %v3819_v50 = vrot.slane %v349_v44, %v3791_v29 }
 0x1eb   :  { %v364_v11 = vcombine.high %v356_v40, %v356_v40 }
 0x1ec   :  { %v323_v32 = vrot.slane %v307_v30, %v3791_v29  ;;  %v314_v33 = vrot.slane %v300_v31, %v3791_v29  ;;  %v315_v47 = vcombine.high %v307_v30, %v307_v30  ;;  %v394_v51 = vcombine.high %v372_v45, %v372_v45 }
 0x1ed   :  { %v433_v52 = vrot.slane %v372_v45, %v3800_v35  ;;  %v379_v56 = vrot.slane %v3819_v50, %v3791_v29  ;;  %v386_v17 = vrot.slane %v364_v11, %v3791_v29  ;;  %v365_v24 = vcombine.high %v3819_v50, %v3819_v50 }
 0x1ee   :  { %480 = vrot.lane.b32.xlu0 %v3783_v21, %s3687_s10  ;;  %v345_v34 = vcombine.high %v323_v32, %v323_v32  ;;  %v330_v36 = vrot.slane %v314_v33, %v3791_v29  ;;  %v337_v53 = vrot.slane %v315_v47, %v3791_v29  ;;  %v401_v55 = vrot.slane %v323_v32, %v3800_v35 }
 0x1ef   :  { %v441_v57 = vrot.slane %v394_v51, %v3800_v35  ;;  %v316_v59 = vcombine.high %v314_v33, %v314_v33  ;;  %v395_v0 = vcombine.high %v379_v56, %v379_v56  ;;  %v449_v1 = vrot.slane %v379_v56, %v3800_v35 }
 0x1f0   :  { %v409_v37 = vrot.slane %v345_v34, %v3800_v35  ;;  %v346_v41 = vcombine.high %v330_v36, %v330_v36  ;;  %v417_v42 = vrot.slane %v330_v36, %v3800_v35  ;;  %v347_v60 = vcombine.high %v337_v53, %v337_v53 }
 0x1f1   :  { %v405_v61 = vrot.slane %v337_v53, %v3800_v35  ;;  %v344_v5 = vrot.slane %v316_v59, %v3791_v29  ;;  %v457_v9 = vrot.slane %v395_v0, %v3800_v35  ;;  %v396_v25 = vcombine.high %v386_v17, %v386_v17 }
 0x1f2   :  { %v425_v46 = vrot.slane %v346_v41, %v3800_v35  ;;  %v413_v6 = vrot.slane %v347_v60, %v3800_v35  ;;  %v437_v27 = vrot.slane %v386_v17, %v3800_v35  ;;  %v393_v33 = vrot.slane %v365_v24, %v3791_v29 }
 0x1f3   :  { %v348_v12 = vcombine.high %v344_v5, %v344_v5  ;;  %v421_v13 = vrot.slane %v344_v5, %v3800_v35  ;;  %v445_v34 = vrot.slane %v396_v25, %v3800_v35 }
 0x1f4   :  { %v453_v40 = vrot.slane %v393_v33, %v3800_v35 }
 0x1f5   :  { %v429_v18 = vrot.slane %v348_v12, %v3800_v35 }
 0x25c   :  { %v3804_v38 = vpop.permute.xlu0 %478 }
 0x25d   :  { %v486_v39 = vadd.f32 %v3804_v38, %v409_v37  ;;  %v488_v43 = vadd.f32 %v3804_v38, %v417_v42  ;;  %v490_v48 = vadd.f32 %v3804_v38, %v425_v46  ;;  %v484_v58 = vadd.f32 %v3804_v38, %v401_v55 }
 0x25e   :  { %v485_v2 = vadd.f32 %v3804_v38, %v405_v61  ;;  %v487_v10 = vadd.f32 %v3804_v38, %v413_v6  ;;  %v489_v16 = vadd.f32 %v3804_v38, %v421_v13  ;;  %v491_v22 = vadd.f32 %v3804_v38, %v429_v18 }
 0x25f   :  { %3305 = vtanh.f32 %v486_v39  ;;  %v397_v39 = vcombine.high %v393_v33, %v393_v33 }
 0x260   :  { %3307 = vtanh.f32 %v488_v43  ;;  %v3816_v49 = vpop.permute.xlu0 %480 }
 0x261   :  { %3309 = vtanh.f32 %v490_v48  ;;  %v492_v54 = vadd.f32 %v3816_v49, %v433_v52  ;;  %v494_v62 = vadd.f32 %v3816_v49, %v441_v57  ;;  %v496_v7 = vadd.f32 %v3816_v49, %v449_v1 }
 0x262   :  { %v498_v14 = vadd.f32 %v3816_v49, %v457_v9  ;;  %v493_v31 = vadd.f32 %v3816_v49, %v437_v27  ;;  %v495_v37 = vadd.f32 %v3816_v49, %v445_v34  ;;  %v497_v42 = vadd.f32 %v3816_v49, %v453_v40 }
 0x263   :  { %3311 = vtanh.f32 %v492_v54  ;;  %v461_v44 = vrot.slane %v397_v39, %v3800_v35 }
 0x264   :  { %3313 = vtanh.f32 %v484_v58 }
 0x265   :  { %3315 = vtanh.f32 %v494_v62  ;;  %v499_v45 = vadd.f32 %v3816_v49, %v461_v44 }
 0x266   :  { %3317 = vtanh.f32 %v485_v2 }
 0x267   :  { %3319 = vtanh.f32 %v496_v7 }
 0x268   :  { %3321 = vtanh.f32 %v487_v10 }
 0x269   :  { %3323 = vtanh.f32 %v498_v14 }
 0x26a   :  { %3325 = vtanh.f32 %v489_v16 }
 0x26b   :  { %3327 = vtanh.f32 %v491_v22 }
 0x26c   :  { %v3306_v63 = vpop.eup %3305  ;;  %3329 = vtanh.f32 %v493_v31 }
 0x26d   :  { %536 = vrot.lane.b32.xlu0 %v3306_v63, %s3687_s10  ;;  %v3308_v8 = vpop.eup %3307  ;;  %3331 = vtanh.f32 %v495_v37 }
 0x26e   :  { %v3310_v15 = vpop.eup %3309  ;;  %3333 = vtanh.f32 %v497_v42 }
 0x26f   :  { %3335 = vtanh.f32 %v499_v45 }
 0x270   :  { %v3312_v19 = vpop.eup %3311 }
 0x271   :  { %540 = vrot.lane.b32.xlu0 %v3308_v8, %s3687_s10  ;;  %v3314_v23 = vpop.eup %3313 }
 0x272   :  { %532 = vrot.lane.b32.xlu1 %v3314_v23, %s3687_s10  ;;  %v3316_v30 = vpop.eup %3315 }
 0x273   :  { %v3318_v32 = vpop.eup %3317 }
 0x274   :  { %v3320_v36 = vpop.eup %3319 }
 0x275   :  { %544 = vrot.lane.b32.xlu0 %v3310_v15, %s3687_s10  ;;  %v3322_v38 = vpop.eup %3321 }
 0x276   :  { %534 = vrot.lane.b32.xlu1 %v3318_v32, %s3687_s10  ;;  %v3324_v41 = vpop.eup %3323 }
 0x277   :  { %v3326_v43 = vpop.eup %3325 }
 0x278   :  { %v3328_v46 = vpop.eup %3327 }
 0x279   :  { %548 = vrot.lane.b32.xlu0 %v3312_v19, %s3687_s10  ;;  %v3330_v47 = vpop.eup %3329 }
 0x27a   :  { %538 = vrot.lane.b32.xlu1 %v3322_v38, %s3687_s10  ;;  %v3332_v48 = vpop.eup %3331 }
 0x27b   :  { %v3334_v50 = vpop.eup %3333 }
 0x27c   :  { %v3336_v51 = vpop.eup %3335 }
 0x27d   :  { %552 = vrot.lane.b32.xlu0 %v3316_v30, %s3687_s10 }
 0x27e   :  { %542 = vrot.lane.b32.xlu1 %v3326_v43, %s3687_s10 }
 0x281   :  { %556 = vrot.lane.b32.xlu0 %v3320_v36, %s3687_s10 }
 0x282   :  { %546 = vrot.lane.b32.xlu1 %v3328_v46, %s3687_s10 }
 0x285   :  { %560 = vrot.lane.b32.xlu0 %v3324_v41, %s3687_s10 }
 0x286   :  { %550 = vrot.lane.b32.xlu1 %v3330_v47, %s3687_s10 }
 0x289   :  { %1045 = vrot.lane.b32.xlu0 %v3779_v20, %s3689_s11 }
 0x28a   :  { %554 = vrot.lane.b32.xlu1 %v3332_v48, %s3687_s10 }
 0x28e   :  { %558 = vrot.lane.b32.xlu1 %v3334_v50, %s3687_s10 }
 0x292   :  { %562 = vrot.lane.b32.xlu1 %v3336_v51, %s3687_s10 }
 0x296   :  { %1047 = vrot.lane.b32.xlu1 %v3783_v21, %s3689_s11 }
 0x2df   :  { %v537_v49 = vpop.permute.xlu0 %536 }
 0x2e3   :  { %v541_v52 = vpop.permute.xlu0 %540 }
 0x2e4   :  { %v533_v53 = vpop.permute.xlu1 %532 }
 0x2e5   :  { %3206 = vmatprep.mubr.msk.f32.mxu0 %vm120_vm0, %v533_v53  ;;  %v1223_v53 = vld [vmem:[#allocation8 + $0x18] sm:$0xff] }
 0x2e6   :  { %3230 = vmatprep.subr.mxu1 %v1223_v53 }
 0x2e7   :  { %v545_v55 = vpop.permute.xlu0 %544  ;;  %3231 = vmatpush3.msra.mxu1 %v1223_v53 }
 0x2e8   :  { %v535_v54 = vpop.permute.xlu1 %534 }
 0x2e9   :  { %3207 = vmatmul.mubr.msk.f32.vlgmr.msra.gmra.mxu0 %vm120_vm0, %v535_v54  ;;  %v1222_v54 = vld [vmem:[#allocation8 + $0x10] sm:$0xff] }
 0x2ea   :  { %3209 = vmatprep.mubr.msk.f32.mxu0 %vm120_vm0, %v537_v49  ;;  %3232 = vmatprep.subr.mxu1 %v1222_v54 }
 0x2eb   :  { %v549_v57 = vpop.permute.xlu0 %548  ;;  %3233 = vmatpush3.msra.mxu1 %v1222_v54 }
 0x2ec   :  { %v539_v56 = vpop.permute.xlu1 %538 }
 0x2ed   :  { %3210 = vmatmul.mubr.msk.f32.gmra.mxu0 %vm120_vm0, %v539_v56 }
 0x2ee   :  { %3212 = vmatprep.mubr.msk.f32.mxu0 %vm120_vm0, %v541_v52 }
 0x2ef   :  { %v553_v60 = vpop.permute.xlu0 %552 }
 0x2f0   :  { %v543_v58 = vpop.permute.xlu1 %542 }
 0x2f1   :  { %3213 = vmatmul.mubr.msk.f32.gmra.mxu0 %vm120_vm0, %v543_v58 }
 0x2f2   :  { %3215 = vmatprep.mubr.msk.f32.mxu0 %vm120_vm0, %v545_v55 }
 0x2f3   :  { %v557_v62 = vpop.permute.xlu0 %556 }
 0x2f4   :  { %v547_v59 = vpop.permute.xlu1 %546 }
 0x2f5   :  { %3216 = vmatmul.mubr.msk.f32.gmra.mxu0 %vm120_vm0, %v547_v59 }
 0x2f6   :  { %3218 = vmatprep.mubr.msk.f32.mxu0 %vm120_vm0, %v549_v57 }
 0x2f7   :  { %v561_v1 = vpop.permute.xlu0 %560 }
 0x2f8   :  { %v551_v61 = vpop.permute.xlu1 %550 }
 0x2f9   :  { %3219 = vmatmul.mubr.msk.f32.gmra.mxu0 %vm120_vm0, %v551_v61 }
 0x2fa   :  { %3221 = vmatprep.mubr.msk.f32.mxu0 %vm120_vm0, %v553_v60 }
 0x2fc   :  { %v555_v63 = vpop.permute.xlu1 %554 }
 0x2fd   :  { %3222 = vmatmul.mubr.msk.f32.gmra.mxu0 %vm120_vm0, %v555_v63 }
 0x2fe   :  { %3224 = vmatprep.mubr.msk.f32.mxu0 %vm120_vm0, %v557_v62 }
 0x300   :  { %v559_v0 = vpop.permute.xlu1 %558 }
 0x301   :  { %3225 = vmatmul.mubr.msk.f32.gmra.mxu0 %vm120_vm0, %v559_v0  ;;  %v1221_v0 = vld [vmem:[#allocation8 + $0x8] sm:$0xff] }
 0x302   :  { %3227 = vmatprep.mubr.msk.f32.mxu0 %vm120_vm0, %v561_v1  ;;  %3234 = vmatprep.subr.mxu1 %v1221_v0 }
 0x303   :  { %3235 = vmatpush3.msra.mxu1 %v1221_v0 }
 0x304   :  { %v563_v2 = vpop.permute.xlu1 %562 }
 0x305   :  { %3228 = vmatmul.mubr.msk.f32.gmra.mxu0 %vm120_vm0, %v563_v2 }
 0x3a9   :  { %v3208_v3 = vpop.f32.mrf.mxu0 }
 0x3aa   :  { %v748_v4 = vsel %vm120_vm0, %v3208_v3, -inf }
 0x3ab   :  { %v749_v5 = vrot.slane %v748_v4, 4  ;;  %v662_v6 = vpop.f32.mrf.mxu0 }
 0x3ac   :  { %v741_v7 = vsel %vm120_vm0, %v662_v6, -inf }
 0x3ad   :  { %v750_v8 = vmax.f32 %v748_v4, %v749_v5  ;;  %v742_v9 = vrot.slane %v741_v7, 4  ;;  %v3891_v10 = vpop.f32.mrf.mxu0 }
 0x3ae   :  { %v762_v11 = vsel %vm120_vm0, %v3891_v10, -inf }
 0x3af   :  { %v751_v12 = vrot.slane %v750_v8, 2  ;;  %v743_v13 = vmax.f32 %v741_v7, %v742_v9  ;;  %v763_v14 = vrot.slane %v762_v11, 4  ;;  %v3895_v15 = vpop.f32.mrf.mxu0  ;;  %v1220_v9 = vld [vmem:[#allocation8] sm:$0xff] }
 0x3b0   :  { %v755_v16 = vsel %vm120_vm0, %v3895_v15, -inf  ;;  %3236 = vmatprep.subr.mxu1 %v1220_v9 }
 0x3b1   :  { %v752_v17 = vmax.f32 %v750_v8, %v751_v12  ;;  %v744_v18 = vrot.slane %v743_v13, 2  ;;  %v764_v19 = vmax.f32 %v762_v11, %v763_v14  ;;  %v756_v22 = vrot.slane %v755_v16, 4  ;;  %v3899_v23 = vpop.f32.mrf.mxu0  ;;  %3237 = vmatpush3.msra.mxu1 %v1220_v9 }
 0x3b2   :  { %v776_v24 = vsel %vm120_vm0, %v3899_v23, -inf }
 0x3b3   :  { %v753_v25 = vrot.slane %v752_v17, 1  ;;  %v745_v27 = vmax.f32 %v743_v13, %v744_v18  ;;  %v765_v30 = vrot.slane %v764_v19, 2  ;;  %v757_v31 = vmax.f32 %v755_v16, %v756_v22  ;;  %v3903_v32 = vpop.f32.mrf.mxu0 }
 0x3b4   :  { %v777_v33 = vrot.slane %v776_v24, 4  ;;  %v769_v34 = vsel %vm120_vm0, %v3903_v32, -inf }
 0x3b5   :  { %v754_v36 = vmax.f32 %v752_v17, %v753_v25  ;;  %v746_v37 = vrot.slane %v745_v27, 1  ;;  %v766_v38 = vmax.f32 %v764_v19, %v765_v30  ;;  %v758_v39 = vrot.slane %v757_v31, 2  ;;  %v3907_v40 = vpop.f32.mrf.mxu0 }
 0x3b6   :  { %v778_v41 = vmax.f32 %v776_v24, %v777_v33  ;;  %v770_v42 = vrot.slane %v769_v34, 4  ;;  %v790_v43 = vsel %vm120_vm0, %v3907_v40, -inf }
 0x3b7   :  { %v854_v44 = vsub.f32 %v3208_v3, %v754_v36  ;;  %v747_v45 = vmax.f32 %v745_v27, %v746_v37  ;;  %v767_v46 = vrot.slane %v766_v38, 1  ;;  %v759_v47 = vmax.f32 %v757_v31, %v758_v39  ;;  %v3911_v48 = vpop.f32.mrf.mxu0 }
 0x3b8   :  { %v779_v50 = vrot.slane %v778_v41, 2  ;;  %v771_v51 = vmax.f32 %v769_v34, %v770_v42  ;;  %v791_v49 = vrot.slane %v790_v43, 4  ;;  %v783_v52 = vsel %vm120_vm0, %v3911_v48, -inf }
 0x3b9   :  { %v871_v55 = vmul.f32 1.442695, %v854_v44  ;;  %v853_v56 = vsub.f32 %v662_v6, %v747_v45  ;;  %v768_v57 = vmax.f32 %v766_v38, %v767_v46  ;;  %v760_v58 = vrot.slane %v759_v47, 1  ;;  %v3915_v59 = vpop.f32.mrf.mxu0 }
 0x3ba   :  { %v780_v60 = vmax.f32 %v778_v41, %v779_v50  ;;  %v772_v61 = vrot.slane %v771_v51, 2  ;;  %v792_v62 = vmax.f32 %v790_v43, %v791_v49  ;;  %v784_v63 = vrot.slane %v783_v52, 4 }
 0x3bb   :  { %3337 = vpow2.f32 %v871_v55  ;;  %v869_v1 = vmul.f32 1.442695, %v853_v56  ;;  %v856_v2 = vsub.f32 %v3891_v10, %v768_v57  ;;  %v761_v3 = vmax.f32 %v759_v47, %v760_v58  ;;  %v3918_v4 = vpop.f32.mrf.mxu0 }
 0x3bc   :  { %v781_v5 = vrot.slane %v780_v60, 1  ;;  %v773_v6 = vmax.f32 %v771_v51, %v772_v61  ;;  %v793_v7 = vrot.slane %v792_v62, 2  ;;  %v785_v8 = vmax.f32 %v783_v52, %v784_v63 }
 0x3bd   :  { %3339 = vpow2.f32 %v869_v1  ;;  %v875_v11 = vmul.f32 1.442695, %v856_v2  ;;  %v855_v12 = vsub.f32 %v3895_v15, %v761_v3  ;;  %v804_v13 = vsel %vm120_vm0, %v3915_v59, -inf  ;;  %v3923_v14 = vpop.f32.mrf.mxu0 }
 0x3be   :  { %v782_v10 = vmax.f32 %v780_v60, %v781_v5  ;;  %v774_v16 = vrot.slane %v773_v6, 1  ;;  %v794_v17 = vmax.f32 %v792_v62, %v793_v7  ;;  %v786_v18 = vrot.slane %v785_v8, 2 }
 0x3bf   :  { %3341 = vpow2.f32 %v875_v11  ;;  %v873_v19 = vmul.f32 1.442695, %v855_v12  ;;  %v805_v22 = vrot.slane %v804_v13, 4  ;;  %v797_v24 = vsel %vm120_vm0, %v3918_v4, -inf  ;;  %v3927_v25 = vpop.f32.mrf.mxu0 }
 0x3c0   :  { %v858_v15 = vsub.f32 %v3899_v23, %v782_v10  ;;  %v775_v27 = vmax.f32 %v773_v6, %v774_v16  ;;  %v795_v30 = vrot.slane %v794_v17, 1  ;;  %v787_v31 = vmax.f32 %v785_v8, %v786_v18 }
 0x3c1   :  { %3343 = vpow2.f32 %v873_v19  ;;  %v806_v33 = vmax.f32 %v804_v13, %v805_v22  ;;  %v798_v34 = vrot.slane %v797_v24, 4  ;;  %v818_v36 = vsel %vm120_vm0, %v3923_v14, -inf  ;;  %v3935_v45 = vpop.f32.mrf.mxu0 }
 0x3c2   :  { %v879_v37 = vmul.f32 1.442695, %v858_v15  ;;  %v857_v38 = vsub.f32 %v3903_v32, %v775_v27  ;;  %v796_v39 = vmax.f32 %v794_v17, %v795_v30  ;;  %v788_v41 = vrot.slane %v787_v31, 1 }
 0x3c3   :  { %v807_v42 = vrot.slane %v806_v33, 2  ;;  %v799_v43 = vmax.f32 %v797_v24, %v798_v34  ;;  %v819_v44 = vrot.slane %v818_v36, 4  ;;  %v811_v23 = vsel %vm120_vm0, %v3927_v25, -inf }
 0x3c4   :  { %3345 = vpow2.f32 %v879_v37  ;;  %v877_v46 = vmul.f32 1.442695, %v857_v38  ;;  %v860_v47 = vsub.f32 %v3907_v40, %v796_v39  ;;  %v789_v50 = vmax.f32 %v787_v31, %v788_v41 }
 0x3c5   :  { %v808_v51 = vmax.f32 %v806_v33, %v807_v42  ;;  %v800_v49 = vrot.slane %v799_v43, 2  ;;  %v820_v52 = vmax.f32 %v818_v36, %v819_v44  ;;  %v812_v53 = vrot.slane %v811_v23, 4 }
 0x3c6   :  { %3347 = vpow2.f32 %v877_v46  ;;  %v883_v32 = vmul.f32 1.442695, %v860_v47  ;;  %v859_v54 = vsub.f32 %v3911_v48, %v789_v50  ;;  %v832_v55 = vsel %vm120_vm0, %v3935_v45, -inf }
 0x3c7   :  { %v809_v56 = vrot.slane %v808_v51, 1  ;;  %v801_v57 = vmax.f32 %v799_v43, %v800_v49  ;;  %v821_v58 = vrot.slane %v820_v52, 2  ;;  %v813_v60 = vmax.f32 %v811_v23, %v812_v53 }
 0x3c8   :  { %v3941_v61 = vpop.eup %3337  ;;  %3349 = vpow2.f32 %v883_v32  ;;  %v881_v40 = vmul.f32 1.442695, %v859_v54  ;;  %v833_v62 = vrot.slane %v832_v55, 4 }
 0x3c9   :  { %v908_v63 = vsel %vm120_vm0, %v3941_v61, 0.0  ;;  %v810_v0 = vmax.f32 %v808_v51, %v809_v56  ;;  %v802_v1 = vrot.slane %v801_v57, 1  ;;  %v822_v2 = vmax.f32 %v820_v52, %v821_v58 }
 0x3ca   :  { %v3945_v3 = vpop.eup %3339  ;;  %v909_v48 = vrot.slane %v908_v63, 4  ;;  %3351 = vpow2.f32 %v881_v40  ;;  %v814_v5 = vrot.slane %v813_v60, 2  ;;  %v834_v6 = vmax.f32 %v832_v55, %v833_v62 }
 0x3cb   :  { %v901_v7 = vsel %vm120_vm0, %v3945_v3, 0.0  ;;  %v862_v8 = vsub.f32 %v3915_v59, %v810_v0  ;;  %v803_v9 = vmax.f32 %v801_v57, %v802_v1  ;;  %v823_v11 = vrot.slane %v822_v2, 1 }
 0x3cc   :  { %v3950_v12 = vpop.eup %3341  ;;  %v910_v13 = vadd.f32 %v909_v48, %v908_v63  ;;  %v902_v10 = vrot.slane %v901_v7, 4  ;;  %v815_v16 = vmax.f32 %v813_v60, %v814_v5  ;;  %v835_v17 = vrot.slane %v834_v6, 2 }
 0x3cd   :  { %v922_v18 = vsel %vm120_vm0, %v3950_v12, 0.0  ;;  %v887_v19 = vmul.f32 1.442695, %v862_v8  ;;  %v861_v22 = vsub.f32 %v3918_v4, %v803_v9  ;;  %v824_v24 = vmax.f32 %v822_v2, %v823_v11  ;;  %v3975_v8 = vpop.f32.mrf.mxu0 }
 0x3ce   :  { %v3955_v15 = vpop.eup %3343  ;;  %v911_v27 = vrot.slane %v910_v13, 2  ;;  %v903_v30 = vadd.f32 %v902_v10, %v901_v7  ;;  %v923_v59 = vrot.slane %v922_v18, 4  ;;  %v816_v31 = vrot.slane %v815_v16, 1 }
 0x3cf   :  { %v915_v33 = vsel %vm120_vm0, %v3955_v15, 0.0  ;;  %v885_v34 = vmul.f32 1.442695, %v861_v22  ;;  %v864_v36 = vsub.f32 %v3923_v14, %v824_v24  ;;  %3353 = vpow2.f32 %v887_v19 }
 0x3d0   :  { %v912_v37 = vadd.f32 %v911_v27, %v910_v13  ;;  %v904_v38 = vrot.slane %v903_v30, 2  ;;  %v924_v39 = vadd.f32 %v923_v59, %v922_v18  ;;  %v916_v41 = vrot.slane %v915_v33, 4 }
 0x3d1   :  { %v3960_v42 = vpop.eup %3345  ;;  %v891_v4 = vmul.f32 1.442695, %v864_v36  ;;  %v817_v43 = vmax.f32 %v815_v16, %v816_v31  ;;  %v836_v44 = vmax.f32 %v834_v6, %v835_v17  ;;  %3355 = vpow2.f32 %v885_v34 }
 0x3d2   :  { %v913_v23 = vrot.slane %v912_v37, 1  ;;  %v905_v46 = vadd.f32 %v904_v38, %v903_v30  ;;  %v925_v47 = vrot.slane %v924_v39, 2  ;;  %v917_v50 = vadd.f32 %v916_v41, %v915_v33 }
 0x3d3   :  { %v3962_v51 = vpop.eup %3347  ;;  %v936_v49 = vsel %vm120_vm0, %v3960_v42, 0.0  ;;  %v863_v14 = vsub.f32 %v3927_v25, %v817_v43  ;;  %v837_v52 = vrot.slane %v836_v44, 1  ;;  %3357 = vpow2.f32 %v891_v4 }
 0x3d4   :  { %v914_v53 = vadd.f32 %v913_v23, %v912_v37  ;;  %v906_v32 = vrot.slane %v905_v46, 1  ;;  %v926_v54 = vadd.f32 %v925_v47, %v924_v39  ;;  %v918_v55 = vrot.slane %v917_v50, 2 }
 0x3d5   :  { %v3967_v56 = vpop.eup %3349  ;;  %v937_v57 = vrot.slane %v936_v49, 4  ;;  %v929_v58 = vsel %vm120_vm0, %v3962_v51, 0.0  ;;  %v838_v60 = vmax.f32 %v836_v44, %v837_v52  ;;  %v889_v48 = vmul.f32 1.442695, %v863_v14 }
 0x3d6   :  { %3359 = vrcp.f32 %v914_v53  ;;  %v907_v40 = vadd.f32 %v906_v32, %v905_v46  ;;  %v927_v62 = vrot.slane %v926_v54, 1  ;;  %v919_v63 = vadd.f32 %v918_v55, %v917_v50 }
 0x3d7   :  { %v3971_v0 = vpop.eup %3351  ;;  %v938_v25 = vadd.f32 %v937_v57, %v936_v49  ;;  %v930_v1 = vrot.slane %v929_v58, 4  ;;  %v950_v2 = vsel %vm120_vm0, %v3967_v56, 0.0  ;;  %v866_v10 = vsub.f32 %v3935_v45, %v838_v60  ;;  %v3994_v60 = vpop.permute.xlu0 %1045 }
 0x3d8   :  { %3361 = vrcp.f32 %v907_v40  ;;  %v928_v5 = vadd.f32 %v927_v62, %v926_v54  ;;  %v920_v6 = vrot.slane %v919_v63, 1  ;;  %v951_v7 = vrot.slane %v950_v2, 4 }
 0x3d9   :  { %v939_v9 = vrot.slane %v938_v25, 2  ;;  %v931_v11 = vadd.f32 %v930_v1, %v929_v58  ;;  %v943_v13 = vsel %vm120_vm0, %v3971_v0, 0.0  ;;  %v825_v24 = vsel %vm120_vm0, %v3975_v8, -inf  ;;  %v3999_v1 = vpop.f32.mrf.mxu0 }
 0x3da   :  { %3363 = vrcp.f32 %v928_v5  ;;  %v921_v16 = vadd.f32 %v920_v6, %v919_v63  ;;  %v952_v17 = vadd.f32 %v951_v7, %v950_v2  ;;  %v944_v18 = vrot.slane %v943_v13, 4 }
 0x3db   :  { %v940_v19 = vadd.f32 %v939_v9, %v938_v25  ;;  %v932_v22 = vrot.slane %v931_v11, 2  ;;  %3365 = vpow2.f32 %v889_v48  ;;  %v895_v36 = vmul.f32 1.442695, %v866_v10 }
 0x3dc   :  { %3367 = vrcp.f32 %v921_v16  ;;  %v945_v27 = vadd.f32 %v944_v18, %v943_v13  ;;  %v953_v31 = vrot.slane %v952_v17, 2  ;;  %v3982_v33 = vpop.eup %3353  ;;  %v826_v45 = vrot.slane %v825_v24, 4 }
 0x3dd   :  { %v941_v30 = vrot.slane %v940_v19, 1  ;;  %v933_v59 = vadd.f32 %v932_v22, %v931_v11  ;;  %v964_v44 = vsel %vm120_vm0, %v3982_v33, 0.0  ;;  %v846_v11 = vsel %vm120_vm0, %v3999_v1, -inf }
 0x3de   :  { %v946_v34 = vrot.slane %v945_v27, 2  ;;  %v3984_v39 = vpop.eup %3355  ;;  %v954_v43 = vadd.f32 %v953_v31, %v952_v17  ;;  %v827_v47 = vmax.f32 %v825_v24, %v826_v45  ;;  %v965_v49 = vrot.slane %v964_v44, 4 }
 0x3df   :  { %v942_v37 = vadd.f32 %v941_v30, %v940_v19  ;;  %v934_v38 = vrot.slane %v933_v59, 1  ;;  %v957_v32 = vsel %vm120_vm0, %v3984_v39, 0.0  ;;  %v847_v31 = vrot.slane %v846_v11, 4 }
 0x3e0   :  { %v947_v41 = vadd.f32 %v946_v34, %v945_v27  ;;  %v3988_v23 = vpop.eup %3357  ;;  %v955_v52 = vrot.slane %v954_v43, 1  ;;  %v828_v57 = vrot.slane %v827_v47, 2  ;;  %v966_v63 = vadd.f32 %v965_v49, %v964_v44 }
 0x3e1   :  { %3369 = vrcp.f32 %v942_v37  ;;  %v935_v4 = vadd.f32 %v934_v38, %v933_v59  ;;  %v958_v25 = vrot.slane %v957_v32, 4  ;;  %v978_v6 = vsel %vm120_vm0, %v3988_v23, 0.0 }
 0x3e2   :  { %v948_v46 = vrot.slane %v947_v41, 1  ;;  %3371 = vpow2.f32 %v895_v36  ;;  %v956_v5 = vadd.f32 %v955_v52, %v954_v43  ;;  %v829_v7 = vmax.f32 %v827_v47, %v828_v57 }
 0x3e3   :  { %v3360_v50 = vpop.eup %3359  ;;  %3373 = vrcp.f32 %v935_v4  ;;  %v967_v10 = vrot.slane %v966_v63, 2  ;;  %v959_v16 = vadd.f32 %v958_v25, %v957_v32 }
 0x3e4   :  { %v949_v53 = vadd.f32 %v948_v46, %v947_v41  ;;  %v1030_v54 = vmul.f32 %v3360_v50, %v3941_v61  ;;  %v830_v27 = vrot.slane %v829_v7, 1 }
 0x3e5   :  { %v3362_v14 = vpop.eup %3361  ;;  %v968_v45 = vadd.f32 %v967_v10, %v966_v63  ;;  %v960_v37 = vrot.slane %v959_v16, 2 }
 0x3e6   :  { %v1029_v55 = vmul.f32 %v3362_v14, %v3945_v3  ;;  %3375 = vrcp.f32 %v949_v53  ;;  %v1052_v61 = vmul.f32 %v3994_v60, %v1030_v54  ;;  %v831_v47 = vmax.f32 %v829_v7, %v830_v27  ;;  %v4024_v54 = vpop.f32.mrf.mxu0 }
 0x3e7   :  { %v3364_v58 = vpop.eup %3363  ;;  %3377 = vrcp.f32 %v956_v5  ;;  %v848_v14 = vmax.f32 %v846_v11, %v847_v31  ;;  %v969_v32 = vrot.slane %v968_v45, 1 }
 0x3e8   :  { %v3996_v40 = vpop.eup %3365  ;;  %v1051_v62 = vmul.f32 %v3994_v60, %v1029_v55  ;;  %v1032_v48 = vmul.f32 %v3364_v58, %v3950_v12  ;;  %v1074_v19 = vsel %vm120_vm0, %v1052_v61, 0.0  ;;  %v961_v58 = vadd.f32 %v960_v37, %v959_v16 }
 0x3e9   :  { %v3368_v2 = vpop.eup %3367  ;;  %v971_v9 = vsel %vm120_vm0, %v3996_v40, 0.0  ;;  %v1075_v38 = vrot.slane %v1074_v19, 4  ;;  %v970_v16 = vadd.f32 %v969_v32, %v968_v45 }
 0x3ea   :  { %v1031_v3 = vmul.f32 %v3368_v2, %v3955_v15  ;;  %v1067_v13 = vsel %vm120_vm0, %v1051_v62, 0.0  ;;  %v1054_v17 = vmul.f32 %v3994_v60, %v1032_v48  ;;  %v979_v15 = vrot.slane %v978_v6, 4 }
 0x3eb   :  { %v972_v24 = vrot.slane %v971_v9, 4  ;;  %v1068_v59 = vrot.slane %v1067_v13, 4  ;;  %v1076_v55 = vadd.f32 %v1075_v38, %v1074_v19  ;;  %v865_v48 = vsub.f32 %v3975_v8, %v831_v47 }
 0x3ec   :  { %v1053_v12 = vmul.f32 %v3994_v60, %v1031_v3  ;;  %v1088_v41 = vsel %vm120_vm0, %v1054_v17, 0.0  ;;  %v980_v43 = vadd.f32 %v979_v15, %v978_v6  ;;  %v849_v3 = vrot.slane %v848_v14, 2 }
 0x3ed   :  { %v973_v46 = vadd.f32 %v972_v24, %v971_v9  ;;  %v1069_v50 = vadd.f32 %v1068_v59, %v1067_v13  ;;  %v1089_v52 = vrot.slane %v1088_v41, 4  ;;  %v839_v6 = vsel %vm120_vm0, %v4024_v54, -inf }
 0x3ee   :  { %v3370_v18 = vpop.eup %3369  ;;  %v1081_v22 = vsel %vm120_vm0, %v1053_v12, 0.0  ;;  %v981_v62 = vrot.slane %v980_v43, 2  ;;  %v893_v11 = vmul.f32 1.442695, %v865_v48  ;;  %v840_v13 = vrot.slane %v839_v6, 4 }
 0x3ef   :  { %v4015_v30 = vpop.eup %3371  ;;  %v1034_v36 = vmul.f32 %v3370_v18, %v3960_v42  ;;  %v1082_v4 = vrot.slane %v1081_v22, 4  ;;  %v974_v25 = vrot.slane %v973_v46, 2  ;;  %v1070_v5 = vrot.slane %v1069_v50, 2 }
 0x3f0   :  { %v3374_v34 = vpop.eup %3373  ;;  %v992_v49 = vsel %vm120_vm0, %v4015_v30, 0.0  ;;  %v1090_v7 = vadd.f32 %v1089_v52, %v1088_v41  ;;  %v850_v17 = vmax.f32 %v848_v14, %v849_v3  ;;  %v962_v19 = vrot.slane %v961_v58, 1 }
 0x3f1   :  { %v1033_v44 = vmul.f32 %v3374_v34, %v3962_v51  ;;  %v1056_v53 = vmul.f32 %v3994_v60, %v1034_v36  ;;  %v1083_v57 = vadd.f32 %v1082_v4, %v1081_v22  ;;  %v993_v2 = vrot.slane %v992_v49, 4 }
 0x3f2   :  { %3379 = vpow2.f32 %v893_v11  ;;  %v841_v8 = vmax.f32 %v839_v6, %v840_v13  ;;  %v1077_v22 = vrot.slane %v1076_v55, 2  ;;  %v975_v27 = vadd.f32 %v974_v25, %v973_v46 }
 0x3f3   :  { %v1055_v42 = vmul.f32 %v3994_v60, %v1033_v44  ;;  %v3376_v51 = vpop.eup %3375  ;;  %v1102_v9 = vsel %vm120_vm0, %v1056_v53, 0.0  ;;  %v1084_v12 = vrot.slane %v1083_v57, 2  ;;  %v851_v59 = vrot.slane %v850_v17, 1 }
 0x3f4   :  { %v1035_v10 = vmul.f32 %v3376_v51, %v3971_v0  ;;  %v3378_v15 = vpop.eup %3377  ;;  %v1103_v24 = vrot.slane %v1102_v9, 4  ;;  %v1071_v31 = vadd.f32 %v1070_v5, %v1069_v50  ;;  %v1091_v34 = vrot.slane %v1090_v7, 2 }
 0x3f5   :  { %v1095_v63 = vsel %vm120_vm0, %v1055_v42, 0.0  ;;  %v994_v36 = vadd.f32 %v993_v2, %v992_v49  ;;  %v842_v37 = vrot.slane %v841_v8, 2  ;;  %v1085_v38 = vadd.f32 %v1084_v12, %v1083_v57 }
 0x3f6   :  { %v1096_v61 = vrot.slane %v1095_v63, 4  ;;  %v1036_v41 = vmul.f32 %v3378_v15, %v3967_v56  ;;  %v1057_v0 = vmul.f32 %v3994_v60, %v1035_v10  ;;  %v852_v45 = vmax.f32 %v850_v17, %v851_v59 }
 0x3f7   :  { %v963_v4 = vadd.f32 %v962_v19, %v961_v58  ;;  %v982_v44 = vadd.f32 %v981_v62, %v980_v43  ;;  %v843_v47 = vmax.f32 %v841_v8, %v842_v37  ;;  %v1078_v52 = vadd.f32 %v1077_v22, %v1076_v55 }
 0x3f8   :  { %v1097_v18 = vadd.f32 %v1096_v61, %v1095_v63  ;;  %v976_v53 = vrot.slane %v975_v27, 1  ;;  %v868_v46 = vsub.f32 %v3999_v1, %v852_v45  ;;  %v1104_v42 = vadd.f32 %v1103_v24, %v1102_v9 }
 0x3f9   :  { %v1072_v50 = vrot.slane %v1071_v31, 1  ;;  %v1092_v49 = vadd.f32 %v1091_v34, %v1090_v7  ;;  %v995_v32 = vrot.slane %v994_v36, 2  ;;  %v844_v57 = vrot.slane %v843_v47, 1 }
 0x3fa   :  { %v1098_v14 = vrot.slane %v1097_v18, 2  ;;  %v1086_v51 = vrot.slane %v1085_v38, 1  ;;  %v1058_v56 = vmul.f32 %v3994_v60, %v1036_v41  ;;  %v899_v63 = vmul.f32 1.442695, %v868_v46 }
 0x3fb   :  { %v1109_v58 = vsel %vm120_vm0, %v1057_v0, 0.0  ;;  %3381 = vrcp.f32 %v970_v16  ;;  %v983_v43 = vrot.slane %v982_v44, 1  ;;  %v845_v62 = vmax.f32 %v843_v47, %v844_v57 }
 0x3fc   :  { %v1099_v25 = vadd.f32 %v1098_v14, %v1097_v18  ;;  %v1079_v55 = vrot.slane %v1078_v52, 1  ;;  %v977_v2 = vadd.f32 %v976_v53, %v975_v27  ;;  %3383 = vpow2.f32 %v899_v63 }
 0x3fd   :  { %v1105_v1 = vrot.slane %v1104_v42, 2  ;;  %3385 = vrcp.f32 %v963_v4  ;;  %v996_v48 = vadd.f32 %v995_v32, %v994_v36  ;;  %v867_v5 = vsub.f32 %v4024_v54, %v845_v62 }
 0x3fe   :  { %v1110_v61 = vrot.slane %v1109_v58, 4  ;;  %v1073_v3 = vadd.f32 %v1072_v50, %v1071_v31  ;;  %v1087_v6 = vadd.f32 %v1086_v51, %v1085_v38  ;;  %v1093_v7 = vrot.slane %v1092_v49, 1 }
 0x3ff   :  { %v1116_v60 = vsel %vm120_vm0, %v1058_v56, 0.0  ;;  %v897_v9 = vmul.f32 1.442695, %v867_v5  ;;  %v1100_v11 = vrot.slane %v1099_v25, 1  ;;  %v4039_v10 = vpop.eup %3379  ;;  %v1080_v16 = vadd.f32 %v1079_v55, %v1078_v52 }
 0x400   :  { %v1111_v13 = vadd.f32 %v1110_v61, %v1109_v58  ;;  %v1117_v12 = vrot.slane %v1116_v60, 4  ;;  %3387 = vrcp.f32 %v977_v2  ;;  %v1106_v17 = vadd.f32 %v1105_v1, %v1104_v42 }
 0x401   :  { %v984_v15 = vadd.f32 %v983_v43, %v982_v44  ;;  %v997_v18 = vrot.slane %v996_v48, 1  ;;  %v985_v54 = vsel %vm120_vm0, %v4039_v10, 0.0  ;;  %3389 = vpow2.f32 %v897_v9  ;;  %v1048_v9 = vpop.permute.xlu1 %1047 }
 0x402   :  { %v986_v19 = vrot.slane %v985_v54, 4  ;;  %v1112_v8 = vrot.slane %v1111_v13, 2  ;;  %v1118_v22 = vadd.f32 %v1117_v12, %v1116_v60  ;;  %v1196_v24 = vsel %vm1195_vm1, %v1080_v16, %v1073_v3 }
 0x403   :  { %v1094_v27 = vadd.f32 %v1093_v7, %v1092_v49  ;;  %v1101_v59 = vadd.f32 %v1100_v11, %v1099_v25  ;;  %v1198_v31 = vsel %vm1197_vm2, %v1087_v6, %v1196_v24  ;;  %v1107_v36 = vrot.slane %v1106_v17, 1 }
 0x404   :  { %v987_v34 = vadd.f32 %v986_v19, %v985_v54  ;;  %v1113_v37 = vadd.f32 %v1112_v8, %v1111_v13  ;;  %v1119_v38 = vrot.slane %v1118_v22, 2  ;;  %3391 = vrcp.f32 %v984_v15 }
 0x405   :  { %v998_v41 = vadd.f32 %v997_v18, %v996_v48  ;;  %v1200_v44 = vsel %vm1199_vm3, %v1094_v27, %v1198_v31  ;;  %v1108_v53 = vadd.f32 %v1107_v36, %v1106_v17 }
 0x406   :  { %v988_v0 = vrot.slane %v987_v34, 2  ;;  %v1114_v45 = vrot.slane %v1113_v37, 1  ;;  %v1120_v4 = vadd.f32 %v1119_v38, %v1118_v22  ;;  %v1202_v47 = vsel %vm1201_vm4, %v1101_v59, %v1200_v44 }
 0x407   :  { %3393 = vrcp.f32 %v998_v41  ;;  %v1204_v56 = vsel %vm1203_vm5, %v1108_v53, %v1202_v47 }
 0x408   :  { %v3382_v14 = vpop.eup %3381  ;;  %v989_v52 = vadd.f32 %v988_v0, %v987_v34  ;;  %v1115_v46 = vadd.f32 %v1114_v45, %v1113_v37  ;;  %v1121_v42 = vrot.slane %v1120_v4, 1 }
 0x409   :  { %v4047_v50 = vpop.eup %3383  ;;  %v1038_v3 = vmul.f32 %v3382_v14, %v3982_v33 }
 0x40a   :  { %v3386_v49 = vpop.eup %3385  ;;  %v990_v32 = vrot.slane %v989_v52, 1  ;;  %v1006_v57 = vsel %vm120_vm0, %v4047_v50, 0.0  ;;  %v1122_v51 = vadd.f32 %v1121_v42, %v1120_v4  ;;  %v1206_v58 = vsel %vm1205_vm6, %v1115_v46, %v1204_v56 }
 0x40b   :  { %v1007_v63 = vrot.slane %v1006_v57, 4  ;;  %v1037_v48 = vmul.f32 %v3386_v49, %v3984_v39  ;;  %v1060_v16 = vmul.f32 %v1048_v9, %v1038_v3 }
 0x40c   :  { %v991_v43 = vadd.f32 %v990_v32, %v989_v52  ;;  %v1208_v62 = vsel %vm1207_vm7, %v1122_v51, %v1206_v58 }
 0x40d   :  { %v3388_v25 = vpop.eup %3387  ;;  %v1008_v55 = vadd.f32 %v1007_v63, %v1006_v57  ;;  %v4055_v2 = vadd.f32 %v1208_v62, %v3779_v20  ;;  %v1059_v13 = vmul.f32 %v1048_v9, %v1037_v48  ;;  %v1130_v33 = vsel %vm120_vm0, %v1060_v16, 0.0 }
 0x40e   :  { %v4057_v1 = vpop.eup %3389  ;;  %3395 = vrcp.f32 %v991_v43  ;;  %v1039_v6 = vmul.f32 %v3388_v25, %v3996_v40  ;;  %v1131_v36 = vrot.slane %v1130_v33, 4 }
 0x40f   :  { %v1009_v5 = vrot.slane %v1008_v55, 2  ;;  %v999_v61 = vsel %vm120_vm0, %v4057_v1, 0.0  ;;  %3238 = vmatprep.mubr.msk.f32.mxu1 %vm120_vm0, %v4055_v2  ;;  %v1123_v8 = vsel %vm120_vm0, %v1059_v13, 0.0 }
 0x410   :  { %v1000_v7 = vrot.slane %v999_v61, 4  ;;  %v1061_v39 = vmul.f32 %v1048_v9, %v1039_v6  ;;  %v1124_v59 = vrot.slane %v1123_v8, 4  ;;  %v1132_v4 = vadd.f32 %v1131_v36, %v1130_v33 }
 0x411   :  { %v1010_v60 = vadd.f32 %v1009_v5, %v1008_v55  ;;  %v3392_v20 = vpop.eup %3391 }
 0x412   :  { %v1001_v11 = vadd.f32 %v1000_v7, %v999_v61  ;;  %v1040_v15 = vmul.f32 %v3392_v20, %v3988_v23  ;;  %v1137_v40 = vsel %vm120_vm0, %v1061_v39, 0.0  ;;  %v1125_v0 = vadd.f32 %v1124_v59, %v1123_v8 }
 0x413   :  { %v1011_v12 = vrot.slane %v1010_v60, 1  ;;  %v1138_v37 = vrot.slane %v1137_v40, 4  ;;  %v1133_v46 = vrot.slane %v1132_v4, 2 }
 0x414   :  { %v1002_v17 = vrot.slane %v1001_v11, 2  ;;  %v3394_v54 = vpop.eup %3393  ;;  %v1062_v24 = vmul.f32 %v1048_v9, %v1040_v15  ;;  %v1126_v53 = vrot.slane %v1125_v0, 2 }
 0x415   :  { %v1012_v18 = vadd.f32 %v1011_v12, %v1010_v60  ;;  %v1042_v27 = vmul.f32 %v3394_v54, %v4015_v30  ;;  %v1139_v44 = vadd.f32 %v1138_v37, %v1137_v40  ;;  %v1134_v63 = vadd.f32 %v1133_v46, %v1132_v4 }
 0x416   :  { %v1003_v19 = vadd.f32 %v1002_v17, %v1001_v11  ;;  %v1144_v38 = vsel %vm120_vm0, %v1062_v24, 0.0  ;;  %v1127_v56 = vadd.f32 %v1126_v53, %v1125_v0 }
 0x417   :  { %3397 = vrcp.f32 %v1012_v18  ;;  %v1064_v41 = vmul.f32 %v1048_v9, %v1042_v27  ;;  %v1145_v47 = vrot.slane %v1144_v38, 4  ;;  %v1140_v42 = vrot.slane %v1139_v44, 2 }
 0x418   :  { %v1004_v22 = vrot.slane %v1003_v19, 1  ;;  %v1128_v61 = vrot.slane %v1127_v56, 1  ;;  %v1135_v7 = vrot.slane %v1134_v63, 1 }
 0x419   :  { %v1158_v30 = vsel %vm120_vm0, %v1064_v41, 0.0  ;;  %v1141_v58 = vadd.f32 %v1140_v42, %v1139_v44 }
 0x41a   :  { %v1005_v31 = vadd.f32 %v1004_v22, %v1003_v19  ;;  %v1159_v57 = vrot.slane %v1158_v30, 4  ;;  %v1129_v16 = vadd.f32 %v1128_v61, %v1127_v56  ;;  %v1136_v19 = vadd.f32 %v1135_v7, %v1134_v63 }
 0x41b   :  { %v3396_v34 = vpop.eup %3395  ;;  %v1142_v60 = vrot.slane %v1141_v58, 1 }
 0x41c   :  { %v1041_v23 = vmul.f32 %v3396_v34, %v4039_v10  ;;  %3399 = vrcp.f32 %v1005_v31  ;;  %v1146_v10 = vadd.f32 %v1145_v47, %v1144_v38  ;;  %v1160_v55 = vadd.f32 %v1159_v57, %v1158_v30  ;;  %v3089_v30 = vld [vmem:[%s4562_s6 + $0x2] ss:$0 sm:$0xff] }
 0x41d   :  { %v1143_v15 = vadd.f32 %v1142_v60, %v1141_v58 }
 0x41e   :  { %v1063_v45 = vmul.f32 %v1048_v9, %v1041_v23  ;;  %v1147_v25 = vrot.slane %v1146_v10, 2  ;;  %v1161_v13 = vrot.slane %v1160_v55, 2 }
 0x420   :  { %v1151_v14 = vsel %vm120_vm0, %v1063_v45, 0.0  ;;  %v1148_v11 = vadd.f32 %v1147_v25, %v1146_v10  ;;  %v1162_v33 = vadd.f32 %v1161_v13, %v1160_v55  ;;  %v1311_v10 = vld [vmem:[#allocation11 + $0x20] sm:$0xff] }
 0x421   :  { %v1152_v52 = vrot.slane %v1151_v14, 4 }
 0x422   :  { %v1149_v8 = vrot.slane %v1148_v11, 1  ;;  %v1163_v31 = vrot.slane %v1162_v33, 1 }
 0x423   :  { %v1153_v49 = vadd.f32 %v1152_v52, %v1151_v14 }
 0x424   :  { %v3398_v32 = vpop.eup %3397  ;;  %v1164_v41 = vadd.f32 %v1163_v31, %v1162_v33 }
 0x425   :  { %v1044_v51 = vmul.f32 %v3398_v32, %v4047_v50  ;;  %v1154_v43 = vrot.slane %v1153_v49, 2  ;;  %v1312_v32 = vld [vmem:[#allocation11 + $0x28] sm:$0xff] }
 0x427   :  { %v1066_v62 = vmul.f32 %v1048_v9, %v1044_v51  ;;  %v1155_v20 = vadd.f32 %v1154_v43, %v1153_v49  ;;  %v1314_v49 = vld [vmem:[#allocation11 + $0x38] sm:$0xff] }
 0x428   :  { %3241 = vmatprep.subr.mxu1 %v1314_v49 }
 0x429   :  { %v3400_v48 = vpop.eup %3399  ;;  %v1172_v5 = vsel %vm120_vm0, %v1066_v62, 0.0  ;;  %v1156_v18 = vrot.slane %v1155_v20, 1 }
 0x42a   :  { %v1173_v3 = vrot.slane %v1172_v5, 4  ;;  %v1043_v6 = vmul.f32 %v3400_v48, %v4057_v1  ;;  %v1209_v1 = vsel %vm1195_vm1, %v1136_v19, %v1129_v16 }
 0x42b   :  { %v1157_v24 = vadd.f32 %v1156_v18, %v1155_v20  ;;  %v1210_v59 = vsel %vm1197_vm2, %v1143_v15, %v1209_v1 }
 0x42c   :  { %v1065_v50 = vmul.f32 %v1048_v9, %v1043_v6  ;;  %v1174_v12 = vadd.f32 %v1173_v3, %v1172_v5  ;;  %v1150_v9 = vadd.f32 %v1149_v8, %v1148_v11 }
 0x42e   :  { %v1165_v39 = vsel %vm120_vm0, %v1065_v50, 0.0  ;;  %v1175_v17 = vrot.slane %v1174_v12, 2  ;;  %v1211_v37 = vsel %vm1199_vm3, %v1150_v9, %v1210_v59 }
 0x42f   :  { %v1166_v54 = vrot.slane %v1165_v39, 4  ;;  %v1212_v38 = vsel %vm1201_vm4, %v1157_v24, %v1211_v37 }
 0x430   :  { %v1176_v22 = vadd.f32 %v1175_v17, %v1174_v12  ;;  %v1213_v4 = vsel %vm1203_vm5, %v1164_v41, %v1212_v38 }
 0x431   :  { %v1167_v40 = vadd.f32 %v1166_v54, %v1165_v39 }
 0x432   :  { %v1177_v36 = vrot.slane %v1176_v22, 1 }
 0x433   :  { %v1168_v27 = vrot.slane %v1167_v40, 2 }
 0x434   :  { %v1178_v45 = vadd.f32 %v1177_v36, %v1176_v22 }
 0x435   :  { %v1169_v34 = vadd.f32 %v1168_v27, %v1167_v40 }
 0x437   :  { %v1170_v23 = vrot.slane %v1169_v34, 1 }
 0x439   :  { %v1171_v0 = vadd.f32 %v1170_v23, %v1169_v34 }
 0x43b   :  { %v1214_v44 = vsel %vm1205_vm6, %v1171_v0, %v1213_v4 }
 0x43c   :  { %v1215_v47 = vsel %vm1207_vm7, %v1178_v45, %v1214_v44 }
 0x43d   :  { %v4087_v14 = vadd.f32 %v1215_v47, %v3783_v21  ;;  %v1313_v21 = vld [vmem:[#allocation11 + $0x30] sm:$0xff] }
 0x43f   :  { %3239 = vmatmul.mubr.msk.f32.vlgmr.msra.gmra.mxu1 %vm120_vm0, %v4087_v14 }
 0x440   :  { %3242 = vmatpush3.msra.mxu1 %v1314_v49 }
 0x441   :  { %3243 = vmatprep.subr.mxu1 %v1313_v21 }
 0x442   :  { %3244 = vmatpush3.msra.mxu1 %v1313_v21 }
 0x443   :  { %3245 = vmatprep.subr.mxu1 %v1312_v32 }
 0x444   :  { %3246 = vmatpush3.msra.mxu1 %v1312_v32 }
 0x445   :  { %3247 = vmatprep.subr.mxu1 %v1311_v10 }
 0x446   :  { %3248 = vmatpush3.msra.mxu1 %v1311_v10 }
 0x4ff   :  { %v3240_v52 = vpop.f32.mrf.mxu1 }
 0x500   :  { %v1307_v53 = vadd.f32 %v3240_v52, %v3089_v30 }
 0x501   :  { %v1301_v46 = vpop.f32.mrf.mxu1 }
 0x502   :  { %v1302_v42 = vadd.f32 %v3089_v30, %v1301_v46  ;;  %1497 = vrot.lane.b32.xlu1 %v1307_v53, %s3687_s10  ;;  %v1373_v11 = vrot.slane %v1307_v53, %v3791_v29  ;;  %v1366_v15 = vcombine.high %v1307_v53, %v1307_v53 }
 0x504   :  { %1495 = vrot.lane.b32.xlu0 %v1302_v42, %s3687_s10  ;;  %v1324_v57 = vrot.slane %v1302_v42, %v3791_v29  ;;  %v1317_v51 = vcombine.high %v1302_v42, %v1302_v42  ;;  %v1381_v18 = vcombine.high %v1373_v11, %v1373_v11  ;;  %v1389_v8 = vrot.slane %v1373_v11, %v3791_v29 }
 0x505   :  { %v1380_v1 = vrot.slane %v1366_v15, %v3791_v29 }
 0x506   :  { %2032 = vrot.lane.b32.xlu1 %v1307_v53, %s3690_s14  ;;  %v1332_v56 = vcombine.high %v1324_v57, %v1324_v57  ;;  %v1340_v63 = vrot.slane %v1324_v57, %v3791_v29  ;;  %v1331_v58 = vrot.slane %v1317_v51, %v3791_v29  ;;  %v1403_v24 = vrot.slane %v1381_v18, %v3791_v29 }
 0x507   :  { %v1411_v9 = vcombine.high %v1389_v8, %v1389_v8  ;;  %v1450_v31 = vrot.slane %v1389_v8, %v3800_v35  ;;  %v1382_v37 = vcombine.high %v1380_v1, %v1380_v1  ;;  %v1396_v41 = vrot.slane %v1380_v1, %v3791_v29 }
 0x508   :  { %2030 = vrot.lane.b32.xlu0 %v1302_v42, %s3690_s14  ;;  %v1354_v43 = vrot.slane %v1332_v56, %v3791_v29  ;;  %v1362_v62 = vcombine.high %v1340_v63, %v1340_v63  ;;  %v1418_v55 = vrot.slane %v1340_v63, %v3800_v35  ;;  %v1333_v48 = vcombine.high %v1331_v58, %v1331_v58 }
 0x509   :  { %v1347_v3 = vrot.slane %v1331_v58, %v3791_v29  ;;  %v1413_v23 = vcombine.high %v1403_v24, %v1403_v24  ;;  %v1454_v38 = vrot.slane %v1403_v24, %v3800_v35  ;;  %v1458_v0 = vrot.slane %v1411_v9, %v3800_v35 }
 0x50a   :  { %v1364_v5 = vcombine.high %v1354_v43, %v1354_v43  ;;  %v1422_v61 = vrot.slane %v1354_v43, %v3800_v35  ;;  %v1426_v6 = vrot.slane %v1362_v62, %v3800_v35  ;;  %v1361_v13 = vrot.slane %v1333_v48, %v3791_v29 }
 0x50b   :  { %v1363_v12 = vcombine.high %v1347_v3, %v1347_v3  ;;  %v1434_v16 = vrot.slane %v1347_v3, %v3800_v35  ;;  %v1410_v52 = vrot.slane %v1382_v37, %v3791_v29  ;;  %v1462_v53 = vrot.slane %v1413_v23, %v3800_v35 }
 0x50c   :  { %v1430_v50 = vrot.slane %v1364_v5, %v3800_v35  ;;  %v1365_v54 = vcombine.high %v1361_v13, %v1361_v13  ;;  %v1438_v19 = vrot.slane %v1361_v13, %v3800_v35  ;;  %v1412_v46 = vcombine.high %v1396_v41, %v1396_v41 }
 0x50d   :  { %v1442_v33 = vrot.slane %v1363_v12, %v3800_v35  ;;  %v1466_v42 = vrot.slane %v1396_v41, %v3800_v35  ;;  %v1414_v57 = vcombine.high %v1410_v52, %v1410_v52  ;;  %v1470_v51 = vrot.slane %v1410_v52, %v3800_v35 }
 0x50e   :  { %v1446_v27 = vrot.slane %v1365_v54, %v3800_v35  ;;  %v1474_v56 = vrot.slane %v1412_v46, %v3800_v35 }
 0x574   :  { %v1498_v59 = vpop.permute.xlu1 %1497 }
 0x575   :  { %v1509_v36 = vadd.f32 %v1498_v59, %v1450_v31  ;;  %v1510_v4 = vadd.f32 %v1498_v59, %v1454_v38  ;;  %v1511_v47 = vadd.f32 %v1498_v59, %v1458_v0  ;;  %v1512_v49 = vadd.f32 %v1498_v59, %v1462_v53 }
 0x576   :  { %v1496_v25 = vpop.permute.xlu0 %1495  ;;  %v1513_v32 = vadd.f32 %v1498_v59, %v1466_v42  ;;  %v1514_v63 = vadd.f32 %v1498_v59, %v1470_v51  ;;  %v1515_v43 = vadd.f32 %v1498_v59, %v1474_v56 }
 0x577   :  { %v1501_v7 = vadd.f32 %v1496_v25, %v1418_v55  ;;  %v1502_v60 = vadd.f32 %v1496_v25, %v1422_v61  ;;  %v1503_v20 = vadd.f32 %v1496_v25, %v1426_v6  ;;  %v1504_v39 = vadd.f32 %v1496_v25, %v1430_v50 }
 0x578   :  { %v1505_v17 = vadd.f32 %v1496_v25, %v1434_v16  ;;  %v1506_v40 = vadd.f32 %v1496_v25, %v1438_v19  ;;  %v1507_v22 = vadd.f32 %v1496_v25, %v1442_v33  ;;  %v1508_v34 = vadd.f32 %v1496_v25, %v1446_v27 }
 0x579   :  { %3401 = vtanh.f32 %v1501_v7  ;;  %v1478_v25 = vrot.slane %v1414_v57, %v3800_v35 }
 0x57a   :  { %3403 = vtanh.f32 %v1502_v60 }
 0x57b   :  { %3405 = vtanh.f32 %v1503_v20  ;;  %v1516_v55 = vadd.f32 %v1498_v59, %v1478_v25 }
 0x57c   :  { %3407 = vtanh.f32 %v1504_v39 }
 0x57d   :  { %3409 = vtanh.f32 %v1505_v17 }
 0x57e   :  { %3411 = vtanh.f32 %v1506_v40 }
 0x57f   :  { %3413 = vtanh.f32 %v1507_v22 }
 0x580   :  { %3415 = vtanh.f32 %v1508_v34 }
 0x581   :  { %3417 = vtanh.f32 %v1509_v36 }
 0x582   :  { %3419 = vtanh.f32 %v1510_v4 }
 0x583   :  { %3421 = vtanh.f32 %v1511_v47 }
 0x584   :  { %3423 = vtanh.f32 %v1512_v49 }
 0x585   :  { %3425 = vtanh.f32 %v1513_v32 }
 0x586   :  { %v3402_v45 = vpop.eup %3401  ;;  %3427 = vtanh.f32 %v1514_v63 }
 0x587   :  { %v3404_v44 = vpop.eup %3403  ;;  %3249 = vmatprep.mubr.msk.f32.mxu1 %vm120_vm0, %v3402_v45  ;;  %3429 = vtanh.f32 %v1515_v43 }
 0x588   :  { %v3406_v30 = vpop.eup %3405  ;;  %3250 = vmatmul.mubr.msk.f32.vlgmr.msra.gmra.mxu1 %vm120_vm0, %v3404_v44  ;;  %3431 = vtanh.f32 %v1516_v55 }
 0x589   :  { %3252 = vmatprep.mubr.msk.f32.mxu1 %vm120_vm0, %v3406_v30  ;;  %v3408_v21 = vpop.eup %3407 }
 0x58a   :  { %v3410_v10 = vpop.eup %3409 }
 0x58b   :  { %v3412_v58 = vpop.eup %3411 }
 0x58c   :  { %3253 = vmatmul.mubr.msk.f32.gmra.mxu1 %vm120_vm0, %v3408_v21  ;;  %v3414_v62 = vpop.eup %3413 }
 0x58d   :  { %3255 = vmatprep.mubr.msk.f32.mxu1 %vm120_vm0, %v3410_v10  ;;  %v3416_v48 = vpop.eup %3415 }
 0x58e   :  { %v3418_v5 = vpop.eup %3417 }
 0x58f   :  { %v3420_v61 = vpop.eup %3419 }
 0x590   :  { %3256 = vmatmul.mubr.msk.f32.gmra.mxu1 %vm120_vm0, %v3412_v58  ;;  %v3422_v3 = vpop.eup %3421 }
 0x591   :  { %3258 = vmatprep.mubr.msk.f32.mxu1 %vm120_vm0, %v3414_v62  ;;  %v3424_v6 = vpop.eup %3423 }
 0x592   :  { %v3426_v7 = vpop.eup %3425 }
 0x593   :  { %v3428_v60 = vpop.eup %3427 }
 0x594   :  { %3259 = vmatmul.mubr.msk.f32.gmra.mxu1 %vm120_vm0, %v3416_v48  ;;  %v3430_v20 = vpop.eup %3429 }
 0x595   :  { %3261 = vmatprep.mubr.msk.f32.mxu1 %vm120_vm0, %v3418_v5  ;;  %v3432_v11 = vpop.eup %3431 }
 0x598   :  { %3262 = vmatmul.mubr.msk.f32.gmra.mxu1 %vm120_vm0, %v3420_v61 }
 0x599   :  { %3264 = vmatprep.mubr.msk.f32.mxu1 %vm120_vm0, %v3422_v3 }
 0x59c   :  { %3265 = vmatmul.mubr.msk.f32.gmra.mxu1 %vm120_vm0, %v3424_v6 }
 0x59d   :  { %3267 = vmatprep.mubr.msk.f32.mxu1 %vm120_vm0, %v3426_v7 }
 0x5a0   :  { %3268 = vmatmul.mubr.msk.f32.gmra.mxu1 %vm120_vm0, %v3428_v60 }
 0x5a1   :  { %3270 = vmatprep.mubr.msk.f32.mxu1 %vm120_vm0, %v3430_v20 }
 0x5a4   :  { %3271 = vmatmul.mubr.msk.f32.gmra.mxu1 %vm120_vm0, %v3432_v11 }
 0x648   :  { %v3251_v13 = vpop.f32.mrf.mxu1 }
 0x649   :  { %v1733_v50 = vsel %vm120_vm0, %v3251_v13, -inf }
 0x64a   :  { %v1734_v12 = vrot.slane %v1733_v50, 4  ;;  %v1647_v16 = vpop.f32.mrf.mxu1 }
 0x64b   :  { %v1726_v39 = vsel %vm120_vm0, %v1647_v16, -inf }
 0x64c   :  { %v1735_v17 = vmax.f32 %v1733_v50, %v1734_v12  ;;  %v1727_v15 = vrot.slane %v1726_v39, 4  ;;  %v3254_v18 = vpop.f32.mrf.mxu1 }
 0x64d   :  { %v1747_v54 = vsel %vm120_vm0, %v3254_v18, -inf }
 0x64e   :  { %v1736_v19 = vrot.slane %v1735_v17, 2  ;;  %v1728_v8 = vmax.f32 %v1726_v39, %v1727_v15  ;;  %v1748_v33 = vrot.slane %v1747_v54, 4  ;;  %v1657_v40 = vpop.f32.mrf.mxu1 }
 0x64f   :  { %v1740_v22 = vsel %vm120_vm0, %v1657_v40, -inf }
 0x650   :  { %v1737_v1 = vmax.f32 %v1735_v17, %v1736_v19  ;;  %v1729_v24 = vrot.slane %v1728_v8, 2  ;;  %v1749_v27 = vmax.f32 %v1747_v54, %v1748_v33  ;;  %v1741_v59 = vrot.slane %v1740_v22, 4  ;;  %v4144_v9 = vpop.f32.mrf.mxu1  ;;  %v2201_v54 = vld [vmem:[#allocation10 + $0x18] sm:$0xff] }
 0x651   :  { %v1761_v31 = vsel %vm120_vm0, %v4144_v9, -inf  ;;  %3273 = vmatprep.subr.mxu0 %v2201_v54 }
 0x652   :  { %v1738_v34 = vrot.slane %v1737_v1, 1  ;;  %v1730_v36 = vmax.f32 %v1728_v8, %v1729_v24  ;;  %v1750_v37 = vrot.slane %v1749_v27, 2  ;;  %v1742_v23 = vmax.f32 %v1740_v22, %v1741_v59  ;;  %v4148_v38 = vpop.f32.mrf.mxu1  ;;  %3274 = vmatpush3.msra.mxu0 %v2201_v54 }
 0x653   :  { %v1762_v41 = vrot.slane %v1761_v31, 4  ;;  %v1754_v0 = vsel %vm120_vm0, %v4148_v38, -inf }
 0x654   :  { %v1739_v45 = vmax.f32 %v1737_v1, %v1738_v34  ;;  %v1731_v4 = vrot.slane %v1730_v36, 1  ;;  %v1751_v44 = vmax.f32 %v1749_v27, %v1750_v37  ;;  %v1743_v47 = vrot.slane %v1742_v23, 2  ;;  %v4152_v30 = vpop.f32.mrf.mxu1  ;;  %v2199_v37 = vld [vmem:[#allocation10 + $0x8] sm:$0xff] }
 0x655   :  { %v1763_v52 = vmax.f32 %v1761_v31, %v1762_v41  ;;  %v1755_v53 = vrot.slane %v1754_v0, 4  ;;  %v1775_v46 = vsel %vm120_vm0, %v4152_v30, -inf }
 0x656   :  { %v1839_v42 = vsub.f32 %v3251_v13, %v1739_v45  ;;  %v1732_v49 = vmax.f32 %v1730_v36, %v1731_v4  ;;  %v1752_v21 = vrot.slane %v1751_v44, 1  ;;  %v1744_v32 = vmax.f32 %v1742_v23, %v1743_v47  ;;  %v4156_v10 = vpop.f32.mrf.mxu1  ;;  %v2198_v45 = vld [vmem:[#allocation10] sm:$0xff] }
 0x657   :  { %v1764_v57 = vrot.slane %v1763_v52, 2  ;;  %v1756_v51 = vmax.f32 %v1754_v0, %v1755_v53  ;;  %v1776_v56 = vrot.slane %v1775_v46, 4  ;;  %v1768_v63 = vsel %vm120_vm0, %v4156_v10, -inf }
 0x658   :  { %v1856_v58 = vmul.f32 1.442695, %v1839_v42  ;;  %v1838_v43 = vsub.f32 %v1647_v16, %v1732_v49  ;;  %v1753_v62 = vmax.f32 %v1751_v44, %v1752_v21  ;;  %v1745_v25 = vrot.slane %v1744_v32, 1  ;;  %v4160_v55 = vpop.f32.mrf.mxu1 }
 0x659   :  { %v1765_v48 = vmax.f32 %v1763_v52, %v1764_v57  ;;  %v1757_v5 = vrot.slane %v1756_v51, 2  ;;  %v1777_v61 = vmax.f32 %v1775_v46, %v1776_v56  ;;  %v1769_v3 = vrot.slane %v1768_v63, 4 }
 0x65a   :  { %3433 = vpow2.f32 %v1856_v58  ;;  %v1854_v6 = vmul.f32 1.442695, %v1838_v43  ;;  %v1841_v7 = vsub.f32 %v3254_v18, %v1753_v62  ;;  %v1746_v60 = vmax.f32 %v1744_v32, %v1745_v25  ;;  %v4162_v20 = vpop.f32.mrf.mxu1 }
 0x65b   :  { %v1766_v11 = vrot.slane %v1765_v48, 1  ;;  %v1758_v13 = vmax.f32 %v1756_v51, %v1757_v5  ;;  %v1778_v50 = vrot.slane %v1777_v61, 2  ;;  %v1770_v12 = vmax.f32 %v1768_v63, %v1769_v3 }
 0x65c   :  { %3435 = vpow2.f32 %v1854_v6  ;;  %v1860_v16 = vmul.f32 1.442695, %v1841_v7  ;;  %v1840_v39 = vsub.f32 %v1657_v40, %v1746_v60  ;;  %v1789_v17 = vsel %vm120_vm0, %v4160_v55, -inf  ;;  %v4166_v15 = vpop.f32.mrf.mxu1  ;;  %v2200_v40 = vld [vmem:[#allocation10 + $0x10] sm:$0xff] }
 0x65d   :  { %v1767_v19 = vmax.f32 %v1765_v48, %v1766_v11  ;;  %v1759_v8 = vrot.slane %v1758_v13, 1  ;;  %v1779_v33 = vmax.f32 %v1777_v61, %v1778_v50  ;;  %v1771_v18 = vrot.slane %v1770_v12, 2  ;;  %3275 = vmatprep.subr.mxu0 %v2200_v40 }
 0x65e   :  { %3437 = vpow2.f32 %v1860_v16  ;;  %v1858_v22 = vmul.f32 1.442695, %v1840_v39  ;;  %v1790_v1 = vrot.slane %v1789_v17, 4  ;;  %v1782_v24 = vsel %vm120_vm0, %v4162_v20, -inf  ;;  %v4170_v27 = vpop.f32.mrf.mxu1  ;;  %3276 = vmatpush3.msra.mxu0 %v2200_v40 }
 0x65f   :  { %v1843_v59 = vsub.f32 %v4144_v9, %v1767_v19  ;;  %v1760_v31 = vmax.f32 %v1758_v13, %v1759_v8  ;;  %v1780_v34 = vrot.slane %v1779_v33, 1  ;;  %v1772_v36 = vmax.f32 %v1770_v12, %v1771_v18  ;;  %3277 = vmatprep.subr.mxu0 %v2199_v37 }
 0x660   :  { %3439 = vpow2.f32 %v1858_v22  ;;  %v1791_v23 = vmax.f32 %v1789_v17, %v1790_v1  ;;  %v1783_v41 = vrot.slane %v1782_v24, 4  ;;  %v1803_v0 = vsel %vm120_vm0, %v4166_v15, -inf  ;;  %v4178_v49 = vpop.f32.mrf.mxu1  ;;  %3278 = vmatpush3.msra.mxu0 %v2199_v37 }
 0x661   :  { %v1864_v4 = vmul.f32 1.442695, %v1843_v59  ;;  %v1842_v44 = vsub.f32 %v4148_v38, %v1760_v31  ;;  %v1781_v47 = vmax.f32 %v1779_v33, %v1780_v34  ;;  %v1773_v52 = vrot.slane %v1772_v36, 1  ;;  %3279 = vmatprep.subr.mxu0 %v2198_v45 }
 0x662   :  { %v1792_v9 = vrot.slane %v1791_v23, 2  ;;  %v1784_v53 = vmax.f32 %v1782_v24, %v1783_v41  ;;  %v1804_v46 = vrot.slane %v1803_v0, 4  ;;  %v1796_v42 = vsel %vm120_vm0, %v4170_v27, -inf  ;;  %3280 = vmatpush3.msra.mxu0 %v2198_v45 }
 0x663   :  { %3441 = vpow2.f32 %v1864_v4  ;;  %v1862_v21 = vmul.f32 1.442695, %v1842_v44  ;;  %v1845_v32 = vsub.f32 %v4152_v30, %v1781_v47  ;;  %v1774_v57 = vmax.f32 %v1772_v36, %v1773_v52 }
 0x664   :  { %v1793_v51 = vmax.f32 %v1791_v23, %v1792_v9  ;;  %v1785_v38 = vrot.slane %v1784_v53, 2  ;;  %v1805_v56 = vmax.f32 %v1803_v0, %v1804_v46  ;;  %v1797_v63 = vrot.slane %v1796_v42, 4 }
 0x665   :  { %3443 = vpow2.f32 %v1862_v21  ;;  %v1868_v58 = vmul.f32 1.442695, %v1845_v32  ;;  %v1844_v43 = vsub.f32 %v4156_v10, %v1774_v57  ;;  %v1817_v62 = vsel %vm120_vm0, %v4178_v49, -inf }
 0x666   :  { %v1794_v25 = vrot.slane %v1793_v51, 1  ;;  %v1786_v48 = vmax.f32 %v1784_v53, %v1785_v38  ;;  %v1806_v5 = vrot.slane %v1805_v56, 2  ;;  %v1798_v61 = vmax.f32 %v1796_v42, %v1797_v63 }
 0x667   :  { %v4184_v3 = vpop.eup %3433  ;;  %3445 = vpow2.f32 %v1868_v58  ;;  %v1866_v30 = vmul.f32 1.442695, %v1844_v43  ;;  %v1818_v6 = vrot.slane %v1817_v62, 4 }
 0x668   :  { %v1893_v7 = vsel %vm120_vm0, %v4184_v3, 0.0  ;;  %v1795_v60 = vmax.f32 %v1793_v51, %v1794_v25  ;;  %v1787_v11 = vrot.slane %v1786_v48, 1  ;;  %v1807_v13 = vmax.f32 %v1805_v56, %v1806_v5 }
 0x669   :  { %v4188_v50 = vpop.eup %3435  ;;  %v1894_v10 = vrot.slane %v1893_v7, 4  ;;  %3447 = vpow2.f32 %v1866_v30  ;;  %v1799_v12 = vrot.slane %v1798_v61, 2  ;;  %v1819_v16 = vmax.f32 %v1817_v62, %v1818_v6 }
 0x66a   :  { %v1886_v39 = vsel %vm120_vm0, %v4188_v50, 0.0  ;;  %v1847_v17 = vsub.f32 %v4160_v55, %v1795_v60  ;;  %v1788_v54 = vmax.f32 %v1786_v48, %v1787_v11  ;;  %v1808_v19 = vrot.slane %v1807_v13, 1 }
 0x66b   :  { %v4193_v8 = vpop.eup %3437  ;;  %v1895_v33 = vadd.f32 %v1894_v10, %v1893_v7  ;;  %v1887_v18 = vrot.slane %v1886_v39, 4  ;;  %v1800_v22 = vmax.f32 %v1798_v61, %v1799_v12  ;;  %v1820_v1 = vrot.slane %v1819_v16, 2 }
 0x66c   :  { %v1907_v24 = vsel %vm120_vm0, %v4193_v8, 0.0  ;;  %v1872_v40 = vmul.f32 1.442695, %v1847_v17  ;;  %v1846_v59 = vsub.f32 %v4162_v20, %v1788_v54  ;;  %v1809_v31 = vmax.f32 %v1807_v13, %v1808_v19  ;;  %v4218_v17 = vpop.f32.mrf.mxu1 }
 0x66d   :  { %v4198_v34 = vpop.eup %3439  ;;  %v1896_v36 = vrot.slane %v1895_v33, 2  ;;  %v1888_v37 = vadd.f32 %v1887_v18, %v1886_v39  ;;  %v1908_v55 = vrot.slane %v1907_v24, 4  ;;  %v1801_v23 = vrot.slane %v1800_v22, 1 }
 0x66e   :  { %v1900_v41 = vsel %vm120_vm0, %v4198_v34, 0.0  ;;  %v1870_v0 = vmul.f32 1.442695, %v1846_v59  ;;  %v1849_v45 = vsub.f32 %v4166_v15, %v1809_v31  ;;  %3449 = vpow2.f32 %v1872_v40 }
 0x66f   :  { %v1897_v4 = vadd.f32 %v1896_v36, %v1895_v33  ;;  %v1889_v44 = vrot.slane %v1888_v37, 2  ;;  %v1909_v47 = vadd.f32 %v1908_v55, %v1907_v24  ;;  %v1901_v52 = vrot.slane %v1900_v41, 4 }
 0x670   :  { %v4203_v9 = vpop.eup %3441  ;;  %v1876_v20 = vmul.f32 1.442695, %v1849_v45  ;;  %v1802_v53 = vmax.f32 %v1800_v22, %v1801_v23  ;;  %v1821_v46 = vmax.f32 %v1819_v16, %v1820_v1  ;;  %3451 = vpow2.f32 %v1870_v0 }
 0x671   :  { %v1898_v42 = vrot.slane %v1897_v4, 1  ;;  %v1890_v21 = vadd.f32 %v1889_v44, %v1888_v37  ;;  %v1910_v32 = vrot.slane %v1909_v47, 2  ;;  %v1902_v57 = vadd.f32 %v1901_v52, %v1900_v41 }
 0x672   :  { %v4205_v51 = vpop.eup %3443  ;;  %v1921_v38 = vsel %vm120_vm0, %v4203_v9, 0.0  ;;  %v1848_v15 = vsub.f32 %v4170_v27, %v1802_v53  ;;  %v1822_v56 = vrot.slane %v1821_v46, 1  ;;  %3453 = vpow2.f32 %v1876_v20 }
 0x673   :  { %v1899_v63 = vadd.f32 %v1898_v42, %v1897_v4  ;;  %v1891_v58 = vrot.slane %v1890_v21, 1  ;;  %v1911_v43 = vadd.f32 %v1910_v32, %v1909_v47  ;;  %v1903_v62 = vrot.slane %v1902_v57, 2 }
 0x674   :  { %v4210_v25 = vpop.eup %3445  ;;  %v1922_v48 = vrot.slane %v1921_v38, 4  ;;  %v1914_v5 = vsel %vm120_vm0, %v4205_v51, 0.0  ;;  %v1823_v61 = vmax.f32 %v1821_v46, %v1822_v56  ;;  %v1874_v10 = vmul.f32 1.442695, %v1848_v15 }
 0x675   :  { %3455 = vrcp.f32 %v1899_v63  ;;  %v1892_v30 = vadd.f32 %v1891_v58, %v1890_v21  ;;  %v1912_v6 = vrot.slane %v1911_v43, 1  ;;  %v1904_v7 = vadd.f32 %v1903_v62, %v1902_v57 }
 0x676   :  { %v4214_v60 = vpop.eup %3447  ;;  %v1923_v27 = vadd.f32 %v1922_v48, %v1921_v38  ;;  %v1915_v11 = vrot.slane %v1914_v5, 4  ;;  %v1935_v13 = vsel %vm120_vm0, %v4210_v25, 0.0  ;;  %v1851_v18 = vsub.f32 %v4178_v49, %v1823_v61  ;;  %v4237_v61 = vpop.permute.xlu0 %2030 }
 0x677   :  { %3457 = vrcp.f32 %v1892_v30  ;;  %v1913_v12 = vadd.f32 %v1912_v6, %v1911_v43  ;;  %v1905_v16 = vrot.slane %v1904_v7, 1  ;;  %v1936_v39 = vrot.slane %v1935_v13, 4 }
 0x678   :  { %v1924_v54 = vrot.slane %v1923_v27, 2  ;;  %v1916_v19 = vadd.f32 %v1915_v11, %v1914_v5  ;;  %v1928_v33 = vsel %vm120_vm0, %v4214_v60, 0.0  ;;  %v1810_v31 = vsel %vm120_vm0, %v4218_v17, -inf  ;;  %v4242_v11 = vpop.f32.mrf.mxu1 }
 0x679   :  { %3459 = vrcp.f32 %v1913_v12  ;;  %v1906_v22 = vadd.f32 %v1905_v16, %v1904_v7  ;;  %v1937_v1 = vadd.f32 %v1936_v39, %v1935_v13  ;;  %v1929_v24 = vrot.slane %v1928_v33, 4 }
 0x67a   :  { %v1925_v40 = vadd.f32 %v1924_v54, %v1923_v27  ;;  %v1917_v59 = vrot.slane %v1916_v19, 2  ;;  %3461 = vpow2.f32 %v1874_v10  ;;  %v1880_v45 = vmul.f32 1.442695, %v1851_v18 }
 0x67b   :  { %3463 = vrcp.f32 %v1906_v22  ;;  %v1930_v36 = vadd.f32 %v1929_v24, %v1928_v33  ;;  %v1938_v23 = vrot.slane %v1937_v1, 2  ;;  %v4225_v41 = vpop.eup %3449  ;;  %v1811_v49 = vrot.slane %v1810_v31, 4 }
 0x67c   :  { %v1926_v37 = vrot.slane %v1925_v40, 1  ;;  %v1918_v55 = vadd.f32 %v1917_v59, %v1916_v19  ;;  %v1949_v46 = vsel %vm120_vm0, %v4225_v41, 0.0  ;;  %v1831_v19 = vsel %vm120_vm0, %v4242_v11, -inf }
 0x67d   :  { %v1931_v0 = vrot.slane %v1930_v36, 2  ;;  %v4227_v47 = vpop.eup %3451  ;;  %v1939_v53 = vadd.f32 %v1938_v23, %v1937_v1  ;;  %v1812_v32 = vmax.f32 %v1810_v31, %v1811_v49  ;;  %v1950_v38 = vrot.slane %v1949_v46, 4 }
 0x67e   :  { %v1927_v4 = vadd.f32 %v1926_v37, %v1925_v40  ;;  %v1919_v44 = vrot.slane %v1918_v55, 1  ;;  %v1942_v58 = vsel %vm120_vm0, %v4227_v47, 0.0  ;;  %v1832_v23 = vrot.slane %v1831_v19, 4 }
 0x67f   :  { %v1932_v52 = vadd.f32 %v1931_v0, %v1930_v36  ;;  %v4231_v42 = vpop.eup %3453  ;;  %v1940_v56 = vrot.slane %v1939_v53, 1  ;;  %v1813_v48 = vrot.slane %v1812_v32, 2  ;;  %v1951_v7 = vadd.f32 %v1950_v38, %v1949_v46 }
 0x680   :  { %3465 = vrcp.f32 %v1927_v4  ;;  %v1920_v20 = vadd.f32 %v1919_v44, %v1918_v55  ;;  %v1943_v27 = vrot.slane %v1942_v58, 4  ;;  %v1963_v16 = vsel %vm120_vm0, %v4231_v42, 0.0 }
 0x681   :  { %v1933_v21 = vrot.slane %v1932_v52, 1  ;;  %3467 = vpow2.f32 %v1880_v45  ;;  %v1941_v12 = vadd.f32 %v1940_v56, %v1939_v53  ;;  %v1814_v39 = vmax.f32 %v1812_v32, %v1813_v48 }
 0x682   :  { %v3456_v57 = vpop.eup %3455  ;;  %3469 = vrcp.f32 %v1920_v20  ;;  %v1952_v18 = vrot.slane %v1951_v7, 2  ;;  %v1944_v22 = vadd.f32 %v1943_v27, %v1942_v58 }
 0x683   :  { %v1934_v63 = vadd.f32 %v1933_v21, %v1932_v52  ;;  %v2015_v43 = vmul.f32 %v3456_v57, %v4184_v3  ;;  %v1815_v36 = vrot.slane %v1814_v39, 1 }
 0x684   :  { %v3458_v15 = vpop.eup %3457  ;;  %v1953_v49 = vadd.f32 %v1952_v18, %v1951_v7  ;;  %v1945_v4 = vrot.slane %v1944_v22, 2 }
 0x685   :  { %v2014_v62 = vmul.f32 %v3458_v15, %v4188_v50  ;;  %3471 = vrcp.f32 %v1934_v63  ;;  %v2037_v3 = vmul.f32 %v4237_v61, %v2015_v43  ;;  %v1816_v32 = vmax.f32 %v1814_v39, %v1815_v36  ;;  %v4267_v43 = vpop.f32.mrf.mxu1 }
 0x686   :  { %v3460_v5 = vpop.eup %3459  ;;  %3473 = vrcp.f32 %v1941_v12  ;;  %v1833_v15 = vmax.f32 %v1831_v19, %v1832_v23  ;;  %v1954_v58 = vrot.slane %v1953_v49, 1 }
 0x687   :  { %v4239_v30 = vpop.eup %3461  ;;  %v2036_v6 = vmul.f32 %v4237_v61, %v2014_v62  ;;  %v2017_v10 = vmul.f32 %v3460_v5, %v4193_v8  ;;  %v2059_v40 = vsel %vm120_vm0, %v2037_v3, 0.0  ;;  %v1946_v5 = vadd.f32 %v1945_v4, %v1944_v22 }
 0x688   :  { %v3464_v13 = vpop.eup %3463  ;;  %v1956_v54 = vsel %vm120_vm0, %v4239_v30, 0.0  ;;  %v2060_v44 = vrot.slane %v2059_v40, 4  ;;  %v1955_v22 = vadd.f32 %v1954_v58, %v1953_v49 }
 0x689   :  { %v2016_v50 = vmul.f32 %v3464_v13, %v4198_v34  ;;  %v2052_v33 = vsel %vm120_vm0, %v2036_v6, 0.0  ;;  %v2039_v1 = vmul.f32 %v4237_v61, %v2017_v10  ;;  %v1964_v34 = vrot.slane %v1963_v16, 4 }
 0x68a   :  { %v1957_v31 = vrot.slane %v1956_v54, 4  ;;  %v2053_v55 = vrot.slane %v2052_v33, 4  ;;  %v2061_v62 = vadd.f32 %v2060_v44, %v2059_v40  ;;  %v1850_v10 = vsub.f32 %v4218_v17, %v1816_v32 }
 0x68b   :  { %v2038_v8 = vmul.f32 %v4237_v61, %v2016_v50  ;;  %v2073_v52 = vsel %vm120_vm0, %v2039_v1, 0.0  ;;  %v1965_v53 = vadd.f32 %v1964_v34, %v1963_v16  ;;  %v1834_v50 = vrot.slane %v1833_v15, 2 }
 0x68c   :  { %v1958_v21 = vadd.f32 %v1957_v31, %v1956_v54  ;;  %v2054_v57 = vadd.f32 %v2053_v55, %v2052_v33  ;;  %v2074_v56 = vrot.slane %v2073_v52, 4  ;;  %v1824_v16 = vsel %vm120_vm0, %v4267_v43, -inf }
 0x68d   :  { %v3466_v24 = vpop.eup %3465  ;;  %v2066_v59 = vsel %vm120_vm0, %v2038_v8, 0.0  ;;  %v1966_v6 = vrot.slane %v1965_v53, 2  ;;  %v1878_v19 = vmul.f32 1.442695, %v1850_v10  ;;  %v1825_v33 = vrot.slane %v1824_v16, 4 }
 0x68e   :  { %v4258_v37 = vpop.eup %3467  ;;  %v2019_v45 = vmul.f32 %v3466_v24, %v4203_v9  ;;  %v2067_v20 = vrot.slane %v2066_v59, 4  ;;  %v1959_v27 = vrot.slane %v1958_v21, 2  ;;  %v2055_v12 = vrot.slane %v2054_v57, 2 }
 0x68f   :  { %v3470_v0 = vpop.eup %3469  ;;  %v1977_v38 = vsel %vm120_vm0, %v4258_v37, 0.0  ;;  %v2075_v39 = vadd.f32 %v2074_v56, %v2073_v52  ;;  %v1835_v1 = vmax.f32 %v1833_v15, %v1834_v50  ;;  %v1947_v40 = vrot.slane %v1946_v5, 1 }
 0x690   :  { %v2018_v46 = vmul.f32 %v3470_v0, %v4205_v51  ;;  %v2041_v63 = vmul.f32 %v4237_v61, %v2019_v45  ;;  %v2068_v48 = vadd.f32 %v2067_v20, %v2066_v59  ;;  %v1978_v13 = vrot.slane %v1977_v38, 4 }
 0x691   :  { %3475 = vpow2.f32 %v1878_v19  ;;  %v1826_v17 = vmax.f32 %v1824_v16, %v1825_v33  ;;  %v2062_v59 = vrot.slane %v2061_v62, 2  ;;  %v1960_v36 = vadd.f32 %v1959_v27, %v1958_v21 }
 0x692   :  { %v2040_v9 = vmul.f32 %v4237_v61, %v2018_v46  ;;  %v3472_v51 = vpop.eup %3471  ;;  %v2087_v54 = vsel %vm120_vm0, %v2041_v63, 0.0  ;;  %v2069_v8 = vrot.slane %v2068_v48, 2  ;;  %v1836_v55 = vrot.slane %v1835_v1, 1 }
 0x693   :  { %v2020_v18 = vmul.f32 %v3472_v51, %v4214_v60  ;;  %v3474_v34 = vpop.eup %3473  ;;  %v2088_v31 = vrot.slane %v2087_v54, 4  ;;  %v2056_v23 = vadd.f32 %v2055_v12, %v2054_v57  ;;  %v2076_v0 = vrot.slane %v2075_v39, 2 }
 0x694   :  { %v2080_v7 = vsel %vm120_vm0, %v2040_v9, 0.0  ;;  %v1979_v45 = vadd.f32 %v1978_v13, %v1977_v38  ;;  %v1827_v4 = vrot.slane %v1826_v17, 2  ;;  %v2070_v44 = vadd.f32 %v2069_v8, %v2068_v48 }
 0x695   :  { %v2081_v3 = vrot.slane %v2080_v7, 4  ;;  %v2021_v52 = vmul.f32 %v3474_v34, %v4210_v25  ;;  %v2042_v60 = vmul.f32 %v4237_v61, %v2020_v18  ;;  %v1837_v49 = vmax.f32 %v1835_v1, %v1836_v55 }
 0x696   :  { %v1948_v20 = vadd.f32 %v1947_v40, %v1946_v5  ;;  %v1967_v46 = vadd.f32 %v1966_v6, %v1965_v53  ;;  %v1828_v32 = vmax.f32 %v1826_v17, %v1827_v4  ;;  %v2063_v56 = vadd.f32 %v2062_v59, %v2061_v62 }
 0x697   :  { %v2082_v24 = vadd.f32 %v2081_v3, %v2080_v7  ;;  %v1961_v63 = vrot.slane %v1960_v36, 1  ;;  %v1853_v9 = vsub.f32 %v4242_v11, %v1837_v49  ;;  %v2089_v21 = vadd.f32 %v2088_v31, %v2087_v54 }
 0x698   :  { %v2057_v58 = vrot.slane %v2056_v23, 1  ;;  %v2077_v57 = vadd.f32 %v2076_v0, %v2075_v39  ;;  %v1980_v51 = vrot.slane %v1979_v45, 2  ;;  %v1829_v38 = vrot.slane %v1828_v32, 1 }
 0x699   :  { %v2083_v15 = vrot.slane %v2082_v24, 2  ;;  %v2071_v7 = vrot.slane %v2070_v44, 1  ;;  %v2043_v48 = vmul.f32 %v4237_v61, %v2021_v52  ;;  %v1884_v25 = vmul.f32 1.442695, %v1853_v9 }
 0x69a   :  { %v2094_v27 = vsel %vm120_vm0, %v2042_v60, 0.0  ;;  %3477 = vrcp.f32 %v1955_v22  ;;  %v1968_v5 = vrot.slane %v1967_v46, 1  ;;  %v1830_v53 = vmax.f32 %v1828_v32, %v1829_v38 }
 0x69b   :  { %v2084_v6 = vadd.f32 %v2083_v15, %v2082_v24  ;;  %v2064_v13 = vrot.slane %v2063_v56, 1  ;;  %v1962_v62 = vadd.f32 %v1961_v63, %v1960_v36  ;;  %3479 = vpow2.f32 %v1884_v25 }
 0x69c   :  { %v2090_v10 = vrot.slane %v2089_v21, 2  ;;  %3481 = vrcp.f32 %v1948_v20  ;;  %v1981_v11 = vadd.f32 %v1980_v51, %v1979_v45  ;;  %v1852_v12 = vsub.f32 %v4267_v43, %v1830_v53 }
 0x69d   :  { %v2095_v3 = vrot.slane %v2094_v27, 4  ;;  %v2058_v50 = vadd.f32 %v2057_v58, %v2056_v23  ;;  %v2072_v16 = vadd.f32 %v2071_v7, %v2070_v44  ;;  %v2078_v39 = vrot.slane %v2077_v57, 1 }
 0x69e   :  { %v2101_v61 = vsel %vm120_vm0, %v2043_v48, 0.0  ;;  %v1882_v54 = vmul.f32 1.442695, %v1852_v12  ;;  %v2085_v19 = vrot.slane %v2084_v6, 1  ;;  %v4282_v18 = vpop.eup %3475  ;;  %v2065_v22 = vadd.f32 %v2064_v13, %v2063_v56 }
 0x69f   :  { %v2096_v33 = vadd.f32 %v2095_v3, %v2094_v27  ;;  %v2102_v8 = vrot.slane %v2101_v61, 4  ;;  %3483 = vrcp.f32 %v1962_v62  ;;  %v2091_v1 = vadd.f32 %v2090_v10, %v2089_v21 }
 0x6a0   :  { %v1969_v34 = vadd.f32 %v1968_v5, %v1967_v46  ;;  %v1982_v24 = vrot.slane %v1981_v11, 1  ;;  %v1970_v43 = vsel %vm120_vm0, %v4282_v18, 0.0  ;;  %3485 = vpow2.f32 %v1882_v54 }
 0x6a1   :  { %v1971_v40 = vrot.slane %v1970_v43, 4  ;;  %v2097_v17 = vrot.slane %v2096_v33, 2  ;;  %v2103_v59 = vadd.f32 %v2102_v8, %v2101_v61  ;;  %v2180_v31 = vsel %vm1195_vm1, %v2065_v22, %v2058_v50 }
 0x6a2   :  { %v2079_v36 = vadd.f32 %v2078_v39, %v2077_v57  ;;  %v2086_v55 = vadd.f32 %v2085_v19, %v2084_v6  ;;  %v2181_v23 = vsel %vm1197_vm2, %v2072_v16, %v2180_v31  ;;  %v2092_v45 = vrot.slane %v2091_v1, 1  ;;  %v2033_v19 = vpop.permute.xlu1 %2032 }
 0x6a3   :  { %v1972_v0 = vadd.f32 %v1971_v40, %v1970_v43  ;;  %v2098_v4 = vadd.f32 %v2097_v17, %v2096_v33  ;;  %v2104_v44 = vrot.slane %v2103_v59, 2  ;;  %3487 = vrcp.f32 %v1969_v34 }
 0x6a4   :  { %v1983_v52 = vadd.f32 %v1982_v24, %v1981_v11  ;;  %v2182_v46 = vsel %vm1199_vm3, %v2079_v36, %v2181_v23  ;;  %v2093_v63 = vadd.f32 %v2092_v45, %v2091_v1 }
 0x6a5   :  { %v1973_v60 = vrot.slane %v1972_v0, 2  ;;  %v2099_v49 = vrot.slane %v2098_v4, 1  ;;  %v2105_v20 = vadd.f32 %v2104_v44, %v2103_v59  ;;  %v2183_v32 = vsel %vm1201_vm4, %v2086_v55, %v2182_v46 }
 0x6a6   :  { %3489 = vrcp.f32 %v1983_v52  ;;  %v2184_v48 = vsel %vm1203_vm5, %v2093_v63, %v2183_v32 }
 0x6a7   :  { %v3478_v15 = vpop.eup %3477  ;;  %v1974_v56 = vadd.f32 %v1973_v60, %v1972_v0  ;;  %v2100_v9 = vadd.f32 %v2099_v49, %v2098_v4  ;;  %v2106_v21 = vrot.slane %v2105_v20, 1 }
 0x6a8   :  { %v4290_v58 = vpop.eup %3479  ;;  %v2023_v50 = vmul.f32 %v3478_v15, %v4225_v41 }
 0x6a9   :  { %v3482_v57 = vpop.eup %3481  ;;  %v1975_v51 = vrot.slane %v1974_v56, 1  ;;  %v1991_v38 = vsel %vm120_vm0, %v4290_v58, 0.0  ;;  %v2107_v7 = vadd.f32 %v2106_v21, %v2105_v20  ;;  %v2185_v27 = vsel %vm1205_vm6, %v2100_v9, %v2184_v48 }
 0x6aa   :  { %v1992_v25 = vrot.slane %v1991_v38, 4  ;;  %v2022_v11 = vmul.f32 %v3482_v57, %v4227_v47  ;;  %v2045_v22 = vmul.f32 %v2033_v19, %v2023_v50 }
 0x6ab   :  { %v1976_v5 = vadd.f32 %v1975_v51, %v1974_v56  ;;  %v2186_v53 = vsel %vm1207_vm7, %v2107_v7, %v2185_v27 }
 0x6ac   :  { %v3484_v6 = vpop.eup %3483  ;;  %v1993_v13 = vadd.f32 %v1992_v25, %v1991_v38  ;;  %v2196_v62 = vadd.f32 %v2186_v53, %v4055_v2  ;;  %v2044_v33 = vmul.f32 %v2033_v19, %v2022_v11  ;;  %v2115_v41 = vsel %vm120_vm0, %v2045_v22, 0.0 }
 0x6ad   :  { %v4298_v10 = vpop.eup %3485  ;;  %3491 = vrcp.f32 %v1976_v5  ;;  %v2024_v16 = vmul.f32 %v3484_v6, %v4239_v30  ;;  %v2116_v45 = vrot.slane %v2115_v41, 4 }
 0x6ae   :  { %v1994_v12 = vrot.slane %v1993_v13, 2  ;;  %v1984_v3 = vsel %vm120_vm0, %v4298_v10, 0.0  ;;  %3281 = vmatprep.mubr.msk.f32.mxu0 %vm120_vm0, %v2196_v62  ;;  %v2108_v17 = vsel %vm120_vm0, %v2044_v33, 0.0 }
 0x6af   :  { %v1985_v39 = vrot.slane %v1984_v3, 4  ;;  %v2046_v1 = vmul.f32 %v2033_v19, %v2024_v16  ;;  %v2109_v55 = vrot.slane %v2108_v17, 4  ;;  %v2117_v20 = vadd.f32 %v2116_v45, %v2115_v41 }
 0x6b0   :  { %v1995_v61 = vadd.f32 %v1994_v12, %v1993_v13  ;;  %v3488_v54 = vpop.eup %3487 }
 0x6b1   :  { %v1986_v2 = vadd.f32 %v1985_v39, %v1984_v3  ;;  %v2025_v34 = vmul.f32 %v3488_v54, %v4231_v42  ;;  %v2122_v30 = vsel %vm120_vm0, %v2046_v1, 0.0  ;;  %v2110_v60 = vadd.f32 %v2109_v55, %v2108_v17 }
 0x6b2   :  { %v1996_v8 = vrot.slane %v1995_v61, 1  ;;  %v2123_v4 = vrot.slane %v2122_v30, 4  ;;  %v2118_v9 = vrot.slane %v2117_v20, 2 }
 0x6b3   :  { %v1987_v47 = vrot.slane %v1986_v2, 2  ;;  %v3490_v43 = vpop.eup %3489  ;;  %v2047_v31 = vmul.f32 %v2033_v19, %v2025_v34  ;;  %v2111_v63 = vrot.slane %v2110_v60, 2 }
 0x6b4   :  { %v1997_v24 = vadd.f32 %v1996_v8, %v1995_v61  ;;  %v2027_v36 = vmul.f32 %v3490_v43, %v4258_v37  ;;  %v2124_v46 = vadd.f32 %v2123_v4, %v2122_v30  ;;  %v2119_v25 = vadd.f32 %v2118_v9, %v2117_v20 }
 0x6b5   :  { %v1988_v40 = vadd.f32 %v1987_v47, %v1986_v2  ;;  %v2129_v44 = vsel %vm120_vm0, %v2047_v31, 0.0  ;;  %v2112_v48 = vadd.f32 %v2111_v63, %v2110_v60 }
 0x6b6   :  { %3493 = vrcp.f32 %v1997_v24  ;;  %v2049_v52 = vmul.f32 %v2033_v19, %v2027_v36  ;;  %v2130_v32 = vrot.slane %v2129_v44, 4  ;;  %v2125_v21 = vrot.slane %v2124_v46, 2 }
 0x6b7   :  { %v1989_v59 = vrot.slane %v1988_v40, 1  ;;  %v2113_v12 = vrot.slane %v2112_v48, 1  ;;  %v2120_v16 = vrot.slane %v2119_v25, 1 }
 0x6b8   :  { %v2143_v37 = vsel %vm120_vm0, %v2049_v52, 0.0  ;;  %v2126_v27 = vadd.f32 %v2125_v21, %v2124_v46 }
 0x6b9   :  { %v1990_v23 = vadd.f32 %v1989_v59, %v1988_v40  ;;  %v2144_v38 = vrot.slane %v2143_v37, 4  ;;  %v2114_v8 = vadd.f32 %v2113_v12, %v2112_v48  ;;  %v2121_v43 = vadd.f32 %v2120_v16, %v2119_v25 }
 0x6ba   :  { %v3492_v0 = vpop.eup %3491  ;;  %v2127_v39 = vrot.slane %v2126_v27, 1 }
 0x6bb   :  { %v2026_v42 = vmul.f32 %v3492_v0, %v4282_v18  ;;  %3495 = vrcp.f32 %v1990_v23  ;;  %v2131_v18 = vadd.f32 %v2130_v32, %v2129_v44  ;;  %v2145_v13 = vadd.f32 %v2144_v38, %v2143_v37 }
 0x6bc   :  { %v2128_v47 = vadd.f32 %v2127_v39, %v2126_v27 }
 0x6bd   :  { %v2048_v49 = vmul.f32 %v2033_v19, %v2026_v42  ;;  %v2132_v6 = vrot.slane %v2131_v18, 2  ;;  %v2146_v2 = vrot.slane %v2145_v13, 2 }
 0x6bf   :  { %v2136_v15 = vsel %vm120_vm0, %v2048_v49, 0.0  ;;  %v2133_v54 = vadd.f32 %v2132_v6, %v2131_v18  ;;  %v2147_v17 = vadd.f32 %v2146_v2, %v2145_v13 }
 0x6c0   :  { %v2137_v56 = vrot.slane %v2136_v15, 4 }
 0x6c1   :  { %v2134_v40 = vrot.slane %v2133_v54, 1 }
 0x6c2   :  { %v2138_v57 = vadd.f32 %v2137_v56, %v2136_v15  ;;  %v3108_v15 = vld [vmem:[%s4562_s6 + $0x3] ss:$0 sm:$0xff] }
 0x6c3   :  { %v3494_v51 = vpop.eup %3493  ;;  %v2135_v55 = vadd.f32 %v2134_v40, %v2133_v54 }
 0x6c4   :  { %v2029_v7 = vmul.f32 %v3494_v51, %v4290_v58  ;;  %v2139_v5 = vrot.slane %v2138_v57, 2 }
 0x6c6   :  { %v2051_v53 = vmul.f32 %v2033_v19, %v2029_v7  ;;  %v2140_v61 = vadd.f32 %v2139_v5, %v2138_v57 }
 0x6c8   :  { %v3496_v62 = vpop.eup %3495  ;;  %v2157_v11 = vsel %vm120_vm0, %v2051_v53, 0.0  ;;  %v2141_v34 = vrot.slane %v2140_v61, 1 }
 0x6c9   :  { %v2158_v3 = vrot.slane %v2157_v11, 4  ;;  %v2028_v50 = vmul.f32 %v3496_v62, %v4298_v10  ;;  %v2187_v10 = vsel %vm1195_vm1, %v2121_v43, %v2114_v8 }
 0x6ca   :  { %v2142_v59 = vadd.f32 %v2141_v34, %v2140_v61  ;;  %v2188_v36 = vsel %vm1197_vm2, %v2128_v47, %v2187_v10 }
 0x6cb   :  { %v2159_v58 = vadd.f32 %v2158_v3, %v2157_v11  ;;  %v2050_v33 = vmul.f32 %v2033_v19, %v2028_v50  ;;  %v2148_v19 = vrot.slane %v2147_v17, 1  ;;  %v2189_v45 = vsel %vm1199_vm3, %v2135_v55, %v2188_v36 }
 0x6cc   :  { %v2190_v42 = vsel %vm1201_vm4, %v2142_v59, %v2189_v45 }
 0x6cd   :  { %v2160_v22 = vrot.slane %v2159_v58, 2  ;;  %v2150_v1 = vsel %vm120_vm0, %v2050_v33, 0.0  ;;  %v2149_v44 = vadd.f32 %v2148_v19, %v2147_v17 }
 0x6ce   :  { %v2151_v24 = vrot.slane %v2150_v1, 4 }
 0x6cf   :  { %v2161_v30 = vadd.f32 %v2160_v22, %v2159_v58  ;;  %v2191_v49 = vsel %vm1203_vm5, %v2149_v44, %v2190_v42  ;;  %v4370_v42 = vld [vmem:[%s4562_s6 + $0x4] ss:$0 sm:$0xff]  ;;  %s3692_s6 = smov [#allocation13]  }
 0x6d0   :  { %v2152_v41 = vadd.f32 %v2151_v24, %v2150_v1  ;;  %s3052_s18 = sshll.u32 %s3692_s6, 4  ;;  %s3053_s18 = int_to_ptr.vmem [resolvable:$true] %s3052_s18 }
 0x6d1   :  { %v2162_v0 = vrot.slane %v2161_v30, 1  ;;  %s3649_s3 = scalar_lea.vmem %s3053_s18, 256  ;;  %p3654_p3 = scmp.lt.s32.totalorder %s3053_s18, %s3053_s18 }
 0x6d2   :  { %v2153_v31 = vrot.slane %v2152_v41, 2  ;;  %p3650_p2 = scmp.ne.s32.totalorder %s3053_s18, %s3649_s3  ;;  %p3655_p4 = scmp.lt.s32.totalorder %s3649_s3, %s3649_s3 }
 0x6d3   :  { %v2163_v60 = vadd.f32 %v2162_v0, %v2161_v30 }
 0x6d4   :  { %v2154_v23 = vadd.f32 %v2153_v31, %v2152_v41  ;;  %p3656_p5 = por %p3655_p4, %p3654_p3 }
 0x6d6   :  { %v2155_v4 = vrot.slane %v2154_v23, 1  ;;  %p3657_p6 = pnand %p3656_p5, %p3650_p2 }
 0x6d8   :  { %v2156_v52 = vadd.f32 %v2155_v4, %v2154_v23 }
 0x6da   :  { %v2192_v20 = vsel %vm1205_vm6, %v2156_v52, %v2191_v49 }
 0x6db   :  { %v2193_v46 = vsel %vm1207_vm7, %v2163_v60, %v2192_v20 }
 0x6dc   :  { %v2197_v32 = vadd.f32 %v2193_v46, %v4087_v14 }
 0x6de   :  { %3282 = vmatmul.mubr.msk.f32.vlgmr.msra.gmra.mxu0 %vm120_vm0, %v2197_v32 }
 0x79e   :  { %v3283_v37 = vpop.f32.mrf.mxu0 }
 0x79f   :  { %v2285_v56 = vadd.f32 %v3283_v37, %v3108_v15 }
 0x7a0   :  { %v2279_v63 = vpop.f32.mrf.mxu0 }
 0x7a1   :  { %v2280_v9 = vadd.f32 %v3108_v15, %v2279_v63  ;;  %2471 = vrot.lane.b32.xlu1 %v2285_v56, %s3687_s10  ;;  %v2347_v57 = vrot.slane %v2285_v56, %v3791_v29  ;;  %v2340_v27 = vcombine.high %v2285_v56, %v2285_v56 }
 0x7a3   :  { %2469 = vrot.lane.b32.xlu0 %v2280_v9, %s3687_s10  ;;  %v2298_v21 = vrot.slane %v2280_v9, %v3791_v29  ;;  %v2355_v14 = vcombine.high %v2347_v57, %v2347_v57  ;;  %v2363_v18 = vrot.slane %v2347_v57, %v3791_v29  ;;  %v2291_v7 = vcombine.high %v2280_v9, %v2280_v9 }
 0x7a4   :  { %v2354_v12 = vrot.slane %v2340_v27, %v3791_v29 }
 0x7a5   :  { %v2306_v51 = vcombine.high %v2298_v21, %v2298_v21  ;;  %v4337_v38 = vrot.slane %v2298_v21, %v3791_v29  ;;  %v2377_v25 = vrot.slane %v2355_v14, %v3791_v29  ;;  %v2385_v5 = vcombine.high %v2363_v18, %v2363_v18 }
 0x7a6   :  { %v2305_v6 = vrot.slane %v2291_v7, %v3791_v29  ;;  %v2424_v62 = vrot.slane %v2363_v18, %v3800_v35  ;;  %v2356_v24 = vcombine.high %v2354_v12, %v2354_v12  ;;  %v2370_v43 = vrot.slane %v2354_v12, %v3791_v29 }
 0x7a7   :  { %v2328_v48 = vrot.slane %v2306_v51, %v3791_v29  ;;  %v2336_v53 = vcombine.high %v4337_v38, %v4337_v38  ;;  %v2428_v11 = vrot.slane %v2377_v25, %v3800_v35  ;;  %v2387_v3 = vcombine.high %v2377_v25, %v2377_v25 }
 0x7a8   :  { %v2432_v50 = vrot.slane %v2385_v5, %v3800_v35  ;;  %v2307_v58 = vcombine.high %v2305_v6, %v2305_v6  ;;  %v2321_v33 = vrot.slane %v2305_v6, %v3791_v29  ;;  %v2384_v59 = vrot.slane %v2356_v24, %v3791_v29 }
 0x7a9   :  { %v2338_v13 = vcombine.high %v2328_v48, %v2328_v48  ;;  %v2396_v39 = vrot.slane %v2328_v48, %v3800_v35  ;;  %v2400_v61 = vrot.slane %v2336_v53, %v3800_v35  ;;  %v2436_v40 = vrot.slane %v2387_v3, %v3800_v35 }
 0x7aa   :  { %v2335_v41 = vrot.slane %v2307_v58, %v3791_v29  ;;  %v2408_v10 = vrot.slane %v2321_v33, %v3800_v35  ;;  %v2440_v31 = vrot.slane %v2370_v43, %v3800_v35  ;;  %v2337_v55 = vcombine.high %v2321_v33, %v2321_v33 }
 0x7ab   :  { %v2404_v8 = vrot.slane %v2338_v13, %v3800_v35  ;;  %v2444_v0 = vrot.slane %v2384_v59, %v3800_v35  ;;  %v2386_v60 = vcombine.high %v2370_v43, %v2370_v43  ;;  %v2392_v49 = vrot.slane %v4337_v38, %v3800_v35 }
 0x7ac   :  { %v2412_v19 = vrot.slane %v2335_v41, %v3800_v35  ;;  %v2339_v4 = vcombine.high %v2335_v41, %v2335_v41  ;;  %v2416_v29 = vrot.slane %v2337_v55, %v3800_v35  ;;  %v2388_v14 = vcombine.high %v2384_v59, %v2384_v59 }
 0x7ad   :  { %v2448_v18 = vrot.slane %v2386_v60, %v3800_v35 }
 0x7ae   :  { %v2420_v37 = vrot.slane %v2339_v4, %v3800_v35  ;;  %v2452_v13 = vrot.slane %v2388_v14, %v3800_v35 }
 0x813   :  { %v4348_v16 = vpop.permute.xlu1 %2471 }
 0x814   :  { %v2483_v54 = vadd.f32 %v4348_v16, %v2424_v62  ;;  %v2484_v2 = vadd.f32 %v4348_v16, %v2428_v11  ;;  %v2485_v34 = vadd.f32 %v4348_v16, %v2432_v50  ;;  %v2486_v30 = vadd.f32 %v4348_v16, %v2436_v40 }
 0x815   :  { %v2470_v22 = vpop.permute.xlu0 %2469  ;;  %v2487_v23 = vadd.f32 %v4348_v16, %v2440_v31  ;;  %v2488_v44 = vadd.f32 %v4348_v16, %v2444_v0  ;;  %v2489_v53 = vadd.f32 %v4348_v16, %v2448_v18 }
 0x816   :  { %3497 = vtanh.f32 %v2483_v54  ;;  %v2476_v1 = vadd.f32 %v2470_v22, %v2396_v39  ;;  %v2477_v47 = vadd.f32 %v2470_v22, %v2400_v61  ;;  %v2478_v17 = vadd.f32 %v2470_v22, %v2404_v8 }
 0x817   :  { %3499 = vtanh.f32 %v2484_v2  ;;  %v2479_v36 = vadd.f32 %v2470_v22, %v2408_v10  ;;  %v2480_v45 = vadd.f32 %v2470_v22, %v2412_v19  ;;  %v2481_v32 = vadd.f32 %v2470_v22, %v2416_v29 }
 0x818   :  { %3501 = vtanh.f32 %v2476_v1  ;;  %v2475_v56 = vadd.f32 %v2470_v22, %v2392_v49  ;;  %v2482_v48 = vadd.f32 %v2470_v22, %v2420_v37  ;;  %v2490_v39 = vadd.f32 %v4348_v16, %v2452_v13 }
 0x819   :  { %3503 = vtanh.f32 %v2477_v47 }
 0x81a   :  { %3505 = vtanh.f32 %v2485_v34 }
 0x81b   :  { %3507 = vtanh.f32 %v2478_v17 }
 0x81c   :  { %3509 = vtanh.f32 %v2486_v30 }
 0x81d   :  { %3511 = vtanh.f32 %v2479_v36 }
 0x81e   :  { %3513 = vtanh.f32 %v2487_v23 }
 0x81f   :  { %3515 = vtanh.f32 %v2480_v45 }
 0x820   :  { %3517 = vtanh.f32 %v2488_v44 }
 0x821   :  { %3519 = vtanh.f32 %v2481_v32 }
 0x822   :  { %3521 = vtanh.f32 %v2475_v56  ;;  %v2584_v56 = vand.u32 127, %v304_v26 }
 0x823   :  { %v3498_v52 = vpop.eup %3497  ;;  %3523 = vtanh.f32 %v2482_v48 }
 0x824   :  { %v3500_v20 = vpop.eup %3499  ;;  %v2519_v46 = vmul.f32 %v3498_v52, %v4370_v42  ;;  %3525 = vtanh.f32 %v2489_v53 }
 0x825   :  { %v3502_v15 = vpop.eup %3501  ;;  %v2520_v57 = vmul.f32 %v3500_v20, %v4370_v42  ;;  %3527 = vtanh.f32 %v2490_v39 }
 0x826   :  { %v3504_v63 = vpop.eup %3503  ;;  %v2551_v9 = vsel %vm120_vm0, %v2519_v46, 0.0  ;;  %v2512_v21 = vmul.f32 %v3502_v15, %v4370_v42 }
 0x827   :  { %v3506_v51 = vpop.eup %3505  ;;  %2552 = vadd.xlane.f32.xlu0 %v2551_v9  ;;  %v2513_v7 = vmul.f32 %v3504_v63, %v4370_v42  ;;  %v2554_v27 = vsel %vm120_vm0, %v2520_v57, 0.0 }
 0x828   :  { %v2530_v38 = vsel %vm120_vm0, %v2512_v21, 0.0  ;;  %v3508_v25 = vpop.eup %3507  ;;  %v2521_v5 = vmul.f32 %v3506_v51, %v4370_v42  ;;  %v4439_v21 = vsub.s32 %v2584_v56, %v3788_v28  ;;  %v2695_v56 = vsub.s32 5, %v3788_v28 }
 0x829   :  { %2531 = vadd.xlane.f32.xlu1 %v2530_v38  ;;  %v3510_v6 = vpop.eup %3509  ;;  %v2533_v62 = vsel %vm120_vm0, %v2513_v7, 0.0  ;;  %v2514_v11 = vmul.f32 %v3508_v25, %v4370_v42 }
 0x82a   :  { %v3512_v12 = vpop.eup %3511  ;;  %v2557_v3 = vsel %vm120_vm0, %v2521_v5, 0.0  ;;  %v2522_v50 = vmul.f32 %v3510_v6, %v4370_v42 }
 0x82b   :  { %2555 = vadd.xlane.f32.xlu0 %v2554_v27  ;;  %v3514_v61 = vpop.eup %3513  ;;  %v2536_v54 = vsel %vm120_vm0, %v2514_v11, 0.0  ;;  %v2515_v2 = vmul.f32 %v3512_v12, %v4370_v42 }
 0x82c   :  { %v3516_v58 = vpop.eup %3515  ;;  %v2560_v33 = vsel %vm120_vm0, %v2522_v50, 0.0  ;;  %v2523_v8 = vmul.f32 %v3514_v61, %v4370_v42 }
 0x82d   :  { %2534 = vadd.xlane.f32.xlu1 %v2533_v62  ;;  %v3518_v22 = vpop.eup %3517  ;;  %v2539_v1 = vsel %vm120_vm0, %v2515_v2, 0.0  ;;  %v2516_v47 = vmul.f32 %v3516_v58, %v4370_v42 }
 0x82e   :  { %v3520_v16 = vpop.eup %3519  ;;  %v2563_v34 = vsel %vm120_vm0, %v2523_v8, 0.0  ;;  %v2524_v24 = vmul.f32 %v3518_v22, %v4370_v42 }
 0x82f   :  { %2558 = vadd.xlane.f32.xlu0 %v2557_v3  ;;  %v3522_v43 = vpop.eup %3521  ;;  %v2542_v40 = vsel %vm120_vm0, %v2516_v47, 0.0  ;;  %v2517_v17 = vmul.f32 %v3520_v16, %v4370_v42 }
 0x830   :  { %v3524_v41 = vpop.eup %3523  ;;  %v2566_v10 = vsel %vm120_vm0, %v2524_v24, 0.0  ;;  %v2511_v30 = vmul.f32 %v3522_v43, %v4370_v42 }
 0x831   :  { %2537 = vadd.xlane.f32.xlu1 %v2536_v54  ;;  %v3526_v59 = vpop.eup %3525  ;;  %v2545_v31 = vsel %vm120_vm0, %v2517_v17, 0.0  ;;  %v2518_v36 = vmul.f32 %v3524_v41, %v4370_v42  ;;  %v3691_v17 = vmov 0  }
 0x832   :  { %v2527_v55 = vsel %vm120_vm0, %v2511_v30, 0.0  ;;  %v2525_v19 = vmul.f32 %v3526_v59, %v4370_v42  ;;  %v3528_v23 = vpop.eup %3527  ;;  %v2674_v30 = vsub.s32 2, %v3788_v28 }
 0x833   :  { %2561 = vadd.xlane.f32.xlu0 %v2560_v33  ;;  %v2548_v0 = vsel %vm120_vm0, %v2518_v36, 0.0  ;;  %v2526_v4 = vmul.f32 %v3528_v23, %v4370_v42 }
 0x834   :  { %v2569_v45 = vsel %vm120_vm0, %v2525_v19, 0.0  ;;  %v2681_v19 = vsub.s32 3, %v3788_v28 }
 0x835   :  { %2540 = vadd.xlane.f32.xlu1 %v2539_v1  ;;  %v2572_v29 = vsel %vm120_vm0, %v2526_v4, 0.0 }
 0x837   :  { %2564 = vadd.xlane.f32.xlu0 %v2563_v34 }
 0x839   :  { %2543 = vadd.xlane.f32.xlu1 %v2542_v40 }
 0x83b   :  { %2567 = vadd.xlane.f32.xlu0 %v2566_v10 }
 0x83d   :  { %2546 = vadd.xlane.f32.xlu1 %v2545_v31 }
 0x83f   :  { %2528 = vadd.xlane.f32.xlu0 %v2527_v55  ;;  %v2667_v55 = vsub.s32 1, %v3788_v28 }
 0x841   :  { %2549 = vadd.xlane.f32.xlu1 %v2548_v0 }
 0x843   :  { %2570 = vadd.xlane.f32.xlu0 %v2569_v45  ;;  %v2688_v45 = vsub.s32 4, %v3788_v28 }
 0x847   :  { %2573 = vadd.xlane.f32.xlu0 %v2572_v29 }
 0x8b0   :  { %v4413_v44 = vpop.xlane.xlu0 %2552 }
 0x8b1   :  { %v2823_v7 = vrot.slane %v4413_v44, %v4439_v21 }
 0x8b2   :  { %v4415_v52 = vpop.xlane.xlu1 %2531 }
 0x8b3   :  { %v2592_v51 = vrot.slane %v4415_v52, %v4439_v21 }
 0x8b4   :  { %v4417_v60 = vpop.xlane.xlu0 %2555 }
 0x8b5   :  { %v2827_v14 = vrot.slane %v4417_v60, %v4439_v21 }
 0x8b6   :  { %v4419_v49 = vpop.xlane.xlu1 %2534 }
 0x8b7   :  { %v2596_v26 = vrot.slane %v4419_v49, %v4439_v21  ;;  %v2852_v11 = vsel %vm1195_vm1, %v2827_v14, %v2823_v7  ;;  %v2702_v14 = vsub.s32 6, %v3788_v28  ;;  %v2709_v7 = vsub.s32 7, %v3788_v28 }
 0x8b8   :  { %v4421_v20 = vpop.xlane.xlu0 %2558 }
 0x8b9   :  { %v2831_v38 = vrot.slane %v4421_v20, %v4439_v21 }
 0x8ba   :  { %v4423_v46 = vpop.xlane.xlu1 %2537 }
 0x8bb   :  { %v2600_v48 = vrot.slane %v4423_v46, %v4439_v21  ;;  %v2853_v39 = vsel %vm1197_vm2, %v2831_v38, %v2852_v11 }
 0x8bc   :  { %v4425_v32 = vpop.xlane.xlu0 %2561 }
 0x8bd   :  { %v2835_v25 = vrot.slane %v4425_v32, %v4439_v21 }
 0x8be   :  { %v4427_v15 = vpop.xlane.xlu1 %2540 }
 0x8bf   :  { %v2604_v5 = vrot.slane %v4427_v15, %v4439_v21  ;;  %v2854_v58 = vsel %vm1199_vm3, %v2835_v25, %v2853_v39 }
 0x8c0   :  { %v4429_v42 = vpop.xlane.xlu0 %2564 }
 0x8c1   :  { %v2839_v53 = vrot.slane %v4429_v42, %v4439_v21 }
 0x8c2   :  { %v4431_v37 = vpop.xlane.xlu1 %2543 }
 0x8c3   :  { %v2608_v12 = vrot.slane %v4431_v37, %v4439_v21  ;;  %v2855_v22 = vsel %vm1201_vm4, %v2839_v53, %v2854_v58 }
 0x8c4   :  { %v4434_v63 = vpop.xlane.xlu0 %2567 }
 0x8c5   :  { %v2843_v3 = vrot.slane %v4434_v63, %v4439_v21 }
 0x8c6   :  { %v4436_v9 = vpop.xlane.xlu1 %2546 }
 0x8c7   :  { %v2612_v61 = vrot.slane %v4436_v9, %v4439_v21  ;;  %v2856_v24 = vsel %vm1203_vm5, %v2843_v3, %v2855_v22 }
 0x8c8   :  { %v4441_v57 = vpop.xlane.xlu0 %2528 }
 0x8c9   :  { %v2588_v18 = vrot.slane %v4441_v57, %v4439_v21 }
 0x8ca   :  { %v4465_v13 = vpop.xlane.xlu1 %2549 }
 0x8cb   :  { %v2617_v27 = vsel %vm1195_vm1, %v2592_v51, %v2588_v18  ;;  %v2616_v33 = vrot.slane %v4465_v13, %v4439_v21 }
 0x8cc   :  { %v2618_v6 = vsel %vm1197_vm2, %v2596_v26, %v2617_v27  ;;  %v4467_v62 = vpop.xlane.xlu0 %2570 }
 0x8cd   :  { %v2619_v50 = vsel %vm1199_vm3, %v2600_v48, %v2618_v6  ;;  %v2847_v54 = vrot.slane %v4467_v62, %v4439_v21 }
 0x8ce   :  { %v2620_v2 = vsel %vm1201_vm4, %v2604_v5, %v2619_v50 }
 0x8cf   :  { %v2621_v8 = vsel %vm1203_vm5, %v2608_v12, %v2620_v2  ;;  %v2857_v43 = vsel %vm1205_vm6, %v2847_v54, %v2856_v24 }
 0x8d0   :  { %v4486_v1 = vpop.xlane.xlu0 %2573  ;;  %v2622_v47 = vsel %vm1205_vm6, %v2612_v61, %v2621_v8 }
 0x8d1   :  { %v2851_v16 = vrot.slane %v4486_v1, %v4439_v21  ;;  %v2623_v34 = vsel %vm1207_vm7, %v2616_v33, %v2622_v47 }
 0x8d2   :  { %2625 = vxpose.xlu1.b32.start.end [1/1] (short) (narrow) %v2623_v34, 8 }
 0x8d3   :  { %v2858_v40 = vsel %vm1207_vm7, %v2851_v16, %v2857_v43 }
 0x8d4   :  { %2860 = vxpose.xlu0.b32.start.end [1/1] (short) (narrow) %v2858_v40, 8 }
 0x8f0   :  { %3299 = vset.pattern.permute.xlu1 %v3691_v17 }
 0x8fd   :  { %3300 = vset.pattern.permute.xlu0 %v3691_v17 }
 0x94e   :  { %v2641_v41 = vpop.trf.xlu1 }
 0x94f   :  { %v2661_v10 = vrot.slane %v2641_v41, %v3800_v35  ;;  %v2675_v36 = vrot.slane %v2641_v41, %v2674_v30  ;;  %v2682_v0 = vrot.slane %v2641_v41, %v2681_v19  ;;  %v2689_v29 = vrot.slane %v2641_v41, %v2688_v45 }
 0x950   :  { %v2876_v59 = vpop.trf.xlu0  ;;  %v2696_v51 = vrot.slane %v2641_v41, %v2695_v56  ;;  %v2703_v26 = vrot.slane %v2641_v41, %v2702_v14  ;;  %v2710_v48 = vrot.slane %v2641_v41, %v2709_v7  ;;  %v2668_v25 = vrot.slane %v2641_v41, %v2667_v55 }
 0x951   :  { %2663 = vbcast.lane.b32.xlu0 %v2661_v10, 256  ;;  %v2896_v31 = vrot.slane %v2876_v59, %v3800_v35  ;;  %v2903_v23 = vrot.slane %v2876_v59, %v2667_v55  ;;  %v2910_v4 = vrot.slane %v2876_v59, %v2674_v30  ;;  %v2917_v35 = vrot.slane %v2876_v59, %v2681_v19 }
 0x952   :  { %v2924_v18 = vrot.slane %v2876_v59, %v2688_v45  ;;  %v2931_v38 = vrot.slane %v2876_v59, %v2695_v56  ;;  %v2938_v27 = vrot.slane %v2876_v59, %v2702_v14  ;;  %v2945_v5 = vrot.slane %v2876_v59, %v2709_v7 }
 0x953   :  { %2898 = vbcast.lane.b32.xlu1 %v2896_v31, 256 }
 0x955   :  { %2677 = vbcast.lane.b32.xlu0 %v2675_v36, 256 }
 0x957   :  { %2905 = vbcast.lane.b32.xlu1 %v2903_v23, 256 }
 0x959   :  { %2684 = vbcast.lane.b32.xlu0 %v2682_v0, 256 }
 0x95b   :  { %2912 = vbcast.lane.b32.xlu1 %v2910_v4, 256 }
 0x95d   :  { %2691 = vbcast.lane.b32.xlu0 %v2689_v29, 256 }
 0x95f   :  { %2919 = vbcast.lane.b32.xlu1 %v2917_v35, 256 }
 0x961   :  { %2698 = vbcast.lane.b32.xlu0 %v2696_v51, 256 }
 0x963   :  { %2926 = vbcast.lane.b32.xlu1 %v2924_v18, 256 }
 0x965   :  { %2705 = vbcast.lane.b32.xlu0 %v2703_v26, 256 }
 0x967   :  { %2933 = vbcast.lane.b32.xlu1 %v2931_v38, 256 }
 0x969   :  { %2712 = vbcast.lane.b32.xlu0 %v2710_v48, 256 }
 0x96b   :  { %2670 = vbcast.lane.b32.xlu1 %v2668_v25, 256 }
 0x96f   :  { %2940 = vbcast.lane.b32.xlu1 %v2938_v27, 256 }
 0x973   :  { %2947 = vbcast.lane.b32.xlu1 %v2945_v5, 256 }
 0x9c3   :  { %v2664_v53 = vpop.permute.xlu0 %2663 }
 0x9c4   :  { %v2722_v59 = vadd.f32 %v2664_v53, %v4441_v57 }
 0x9c5   :  { %v2899_v6 = vpop.permute.xlu1 %2898 }
 0x9c6   :  { %v2957_v11 = vadd.f32 %v2899_v6, %v4413_v44  ;;  %v2730_v55 = vmul.f32 0.5, %v2722_v59 }
 0x9c7   :  { %v2678_v39 = vpop.permute.xlu0 %2677 }
 0x9c8   :  { %v2965_v12 = vmul.f32 0.5, %v2957_v11 }
 0x9c9   :  { %v2906_v3 = vpop.permute.xlu1 %2905 }
 0x9ca   :  { %v2958_v50 = vadd.f32 %v2906_v3, %v4417_v60  ;;  %2982 = vperm.xlu1 %3299, %v2965_v12  }
 0x9cb   :  { %v2685_v58 = vpop.permute.xlu0 %2684 }
 0x9cc   :  { %v2966_v28 = vmul.f32 0.5, %v2958_v50 }
 0x9cd   :  { %v2913_v61 = vpop.permute.xlu1 %2912 }
 0x9ce   :  { %v2959_v54 = vadd.f32 %v2913_v61, %v4421_v20  ;;  %2985 = vperm.xlu0 %3300, %v2966_v28  }
 0x9cf   :  { %v2692_v16 = vpop.permute.xlu0 %2691 }
 0x9d0   :  { %v2967_v2 = vmul.f32 0.5, %v2959_v54 }
 0x9d1   :  { %v2920_v33 = vpop.permute.xlu1 %2919 }
 0x9d2   :  { %v2960_v8 = vadd.f32 %v2920_v33, %v4425_v32  ;;  %2988 = vperm.xlu1 %3299, %v2967_v2   ;;  %v2724_v32 = vadd.f32 %v2678_v39, %v4419_v49 }
 0x9d3   :  { %v2699_v20 = vpop.permute.xlu0 %2698 }
 0x9d4   :  { %v2968_v22 = vmul.f32 0.5, %v2960_v8  ;;  %v2732_v31 = vmul.f32 0.5, %v2724_v32  ;;  %v2727_v0 = vadd.f32 %v2699_v20, %v4431_v37 }
 0x9d5   :  { %v2927_v47 = vpop.permute.xlu1 %2926 }
 0x9d6   :  { %v2961_v44 = vadd.f32 %v2927_v47, %v4429_v42  ;;  %2991 = vperm.xlu0 %3300, %v2968_v22  }
 0x9d7   :  { %v2706_v42 = vpop.permute.xlu0 %2705 }
 0x9d8   :  { %v2969_v60 = vmul.f32 0.5, %v2961_v44  ;;  %v2728_v49 = vadd.f32 %v2706_v42, %v4436_v9 }
 0x9d9   :  { %v2934_v34 = vpop.permute.xlu1 %2933 }
 0x9da   :  { %v2962_v24 = vadd.f32 %v2934_v34, %v4434_v63  ;;  %2994 = vperm.xlu1 %3299, %v2969_v60   ;;  %v2726_v63 = vadd.f32 %v2692_v16, %v4427_v15  ;;  %v2736_v45 = vmul.f32 0.5, %v2728_v49  ;;  %v2735_v15 = vmul.f32 0.5, %v2727_v0 }
 0x9db   :  { %v2713_v23 = vpop.permute.xlu0 %2712 }
 0x9dc   :  { %v2970_v43 = vmul.f32 0.5, %v2962_v24  ;;  %v2734_v19 = vmul.f32 0.5, %v2726_v63  ;;  %v2729_v57 = vadd.f32 %v2713_v23, %v4465_v13 }
 0x9dd   :  { %v2671_v40 = vpop.permute.xlu1 %2670 }
 0x9de   :  { %v2723_v17 = vadd.f32 %v2671_v40, %v4415_v52  ;;  %2997 = vperm.xlu0 %3300, %v2970_v43   ;;  %v2725_v52 = vadd.f32 %v2685_v58, %v4423_v46  ;;  %v2737_v29 = vmul.f32 0.5, %v2729_v57 }
 0x9e0   :  { %v2731_v41 = vmul.f32 0.5, %v2723_v17 }
 0x9e1   :  { %v2941_v10 = vpop.permute.xlu1 %2940 }
 0x9e2   :  { %v2963_v30 = vadd.f32 %v2941_v10, %v4467_v62  ;;  %2750 = vperm.xlu1 %3299, %v2731_v41   ;;  %v2733_v62 = vmul.f32 0.5, %v2725_v52 }
 0x9e4   :  { %v2971_v36 = vmul.f32 0.5, %v2963_v30 }
 0x9e5   :  { %v2948_v4 = vpop.permute.xlu1 %2947 }
 0x9e6   :  { %2753 = vperm.xlu1 %3299, %v2732_v31   ;;  %3000 = vperm.xlu0 %3300, %v2971_v36   ;;  %v2964_v56 = vadd.f32 %v2948_v4, %v4486_v1 }
 0x9e8   :  { %v2972_v46 = vmul.f32 0.5, %v2964_v56 }
 0x9ea   :  { %2759 = vperm.xlu1 %3299, %v2734_v19   ;;  %2747 = vperm.xlu0 %3300, %v2730_v55  }
 0x9ee   :  { %2765 = vperm.xlu1 %3299, %v2736_v45   ;;  %2756 = vperm.xlu0 %3300, %v2733_v62  }
 0x9f2   :  { %2768 = vperm.xlu1 %3299, %v2737_v29   ;;  %2762 = vperm.xlu0 %3300, %v2735_v15  }
 0x9f6   :  { %3003 = vperm.xlu0 %3300, %v2972_v46  }
 0xa45   :  { %v2983_v9 = vpop.permute.xlu1 %2982 }
 0xa46   :  { %v3008_v39 = vrot.slane %v2983_v9, %v4439_v21 }
 0xa49   :  { %v2986_v35 = vpop.permute.xlu0 %2985 }
 0xa4a   :  { %v3012_v11 = vrot.slane %v2986_v35, %v4439_v21 }
 0xa4c   :  { %v3037_v8 = vsel %vm1195_vm1, %v3012_v11, %v3008_v39 }
 0xa4d   :  { %v2989_v51 = vpop.permute.xlu1 %2988 }
 0xa4e   :  { %v3016_v3 = vrot.slane %v2989_v51, %v4439_v21 }
 0xa50   :  { %v3038_v44 = vsel %vm1197_vm2, %v3016_v3, %v3037_v8 }
 0xa51   :  { %v2992_v14 = vpop.permute.xlu0 %2991 }
 0xa52   :  { %v3020_v28 = vrot.slane %v2992_v14, %v4439_v21 }
 0xa54   :  { %v3039_v24 = vsel %vm1199_vm3, %v3020_v28, %v3038_v44 }
 0xa55   :  { %v2995_v18 = vpop.permute.xlu1 %2994 }
 0xa56   :  { %v3024_v54 = vrot.slane %v2995_v18, %v4439_v21 }
 0xa58   :  { %v3040_v40 = vsel %vm1201_vm4, %v3024_v54, %v3039_v24 }
 0xa59   :  { %v2998_v37 = vpop.permute.xlu0 %2997 }
 0xa5a   :  { %v3028_v22 = vrot.slane %v2998_v37, %v4439_v21 }
 0xa5c   :  { %v3041_v41 = vsel %vm1203_vm5, %v3028_v22, %v3040_v40 }
 0xa5d   :  { %v2751_v26 = vpop.permute.xlu1 %2750 }
 0xa5e   :  { %v2777_v25 = vrot.slane %v2751_v26, %v4439_v21 }
 0xa61   :  { %v3001_v38 = vpop.permute.xlu0 %3000  ;;  %v2754_v13 = vpop.permute.xlu1 %2753 }
 0xa62   :  { %v2781_v5 = vrot.slane %v2754_v13, %v4439_v21  ;;  %v3032_v16 = vrot.slane %v3001_v38, %v4439_v21 }
 0xa64   :  { %v3042_v42 = vsel %vm1205_vm6, %v3032_v16, %v3041_v41 }
 0xa65   :  { %v2748_v7 = vpop.permute.xlu0 %2747  ;;  %v2760_v48 = vpop.permute.xlu1 %2759 }
 0xa66   :  { %v2773_v27 = vrot.slane %v2748_v7, %v4439_v21  ;;  %v2789_v2 = vrot.slane %v2760_v48, %v4439_v21 }
 0xa68   :  { %v2802_v1 = vsel %vm1195_vm1, %v2777_v25, %v2773_v27 }
 0xa69   :  { %v2757_v53 = vpop.permute.xlu0 %2756  ;;  %v2766_v6 = vpop.permute.xlu1 %2765  ;;  %v2803_v50 = vsel %vm1197_vm2, %v2781_v5, %v2802_v1 }
 0xa6a   :  { %v2785_v12 = vrot.slane %v2757_v53, %v4439_v21  ;;  %v2797_v60 = vrot.slane %v2766_v6, %v4439_v21 }
 0xa6c   :  { %v2804_v61 = vsel %vm1199_vm3, %v2785_v12, %v2803_v50 }
 0xa6d   :  { %v2763_v58 = vpop.permute.xlu0 %2762  ;;  %v2769_v33 = vpop.permute.xlu1 %2768  ;;  %v2805_v34 = vsel %vm1201_vm4, %v2789_v2, %v2804_v61 }
 0xa6e   :  { %v2793_v47 = vrot.slane %v2763_v58, %v4439_v21  ;;  %v2801_v20 = vrot.slane %v2769_v33, %v4439_v21 }
 0xa70   :  { %v2806_v43 = vsel %vm1203_vm5, %v2793_v47, %v2805_v34 }
 0xa71   :  { %v2807_v17 = vsel %vm1205_vm6, %v2797_v60, %v2806_v43  ;;  %v3004_v32 = vpop.permute.xlu0 %3003 }
 0xa72   :  { %v2808_v10 = vsel %vm1207_vm7, %v2801_v20, %v2807_v17  ;;  %v3036_v30 = vrot.slane %v3004_v32, %v4439_v21 }
 0xa73   :  { %2811 = vst.msk [vmem:[#allocation13] sm:$0xff] %vm2810_vm8, %v2808_v10 }
 0xa74   :  { %v3043_v59 = vsel %vm1207_vm7, %v3036_v30, %v3042_v42 }
 0xa75   :  { %3046 = vst.msk [vmem:[#allocation13 + $0x8] sm:$0xff] %vm2810_vm8, %v3043_v59 }
 0xa76   :  { %3660 = shalt.err (!%p3657_p6)
}
 0xa77   :  { %3058 = dma.vmem_to_hbm [thread:$0]  %s3053_s18, 256, %s4563_s7, [#allocation4], %s3681_s29, %s3681_s29, %s3682_s30  }
 0xa78   :  { %3677 = dma.done.wait [#allocation4], 256  }
 0xa79   :  { %3678 = vsyncadd [#allocation4], 4294967040 }
 0xa7a   :  { %3062 = vsyncpa [#allocation3], 1 }
 0xa7b   :  { %3063 = vsyncpa [#allocation6], 1 }
 0xa7c   :  { %3064 = vsyncpa [#allocation9], 1 }
 0xa7d   :  { %3065 = vsyncpa [#allocation12], 1 }
 0xa7e   :  { %3066 = vsyncpa [#allocation4], 1 }

</bundles_post_ra>
